<compile_context>
chip_gen: v6e
topology: v6e:2x2x1
jax: 0.10.0
libtpu: 0.0.40
codegen_flags: <defaults>
</compile_context>

<pallas_src>
import functools
import math

import jax
import jax.numpy as jnp
from jax.experimental import pallas as pl
from jax.experimental.pallas import tpu as pltpu


# ---------------------------------------------------------------------------
# Fused GraphTransformerLayer kernel
#   (QKV proj -> masked attention -> O proj -> +res -> LN -> FFN -> +res -> LN)
# ---------------------------------------------------------------------------

def _layer_kernel(hb_ref, ha_ref, adj_ref,
                  wq_ref, wkv_ref, wo_ref, bo_ref, ln1g_ref, ln1b_ref,
                  w1_ref, b1_ref, w2_ref, b2_ref, ln2g_ref, ln2b_ref,
                  o_ref, *, num_heads, residual, eps):
    hb = hb_ref[...]            # (BN, D) f32 -- dst-node block (also residual)
    ha = ha_ref[...]            # (N,  D) f32 -- all nodes (K/V sources)
    adj = adj_ref[...]          # (BN, N) f32, adj[dst, src]

    dout = wq_ref.shape[1]
    dh = dout // num_heads

    # ---- fused projections: Q for the dst block, K|V for all source nodes ---
    # (1/sqrt(dh) is folded into wq at init; Q/K/V have no bias.)
    q = jnp.dot(hb.astype(jnp.bfloat16), wq_ref[...],
                preferred_element_type=jnp.float32)               # (BN, dout)
    kv = jnp.dot(ha.astype(jnp.bfloat16), wkv_ref[...],
                 preferred_element_type=jnp.float32)              # (N, 2*dout)

    # ---- masked exp-attention per head, assembled lane-dense ----------------
    head_outs = []
    for hi in range(num_heads):
        qh = q[:, hi * dh:(hi + 1) * dh].astype(jnp.bfloat16)     # (BN, dh)
        kh = kv[:, hi * dh:(hi + 1) * dh].astype(jnp.bfloat16)    # (N, dh)
        vh = kv[:, dout + hi * dh: dout + (hi + 1) * dh].astype(jnp.bfloat16)
        # score[dst, src] = clamp(Q[dst].K[src] / sqrt(dh), -5, 5)
        s = jax.lax.dot_general(qh, kh, (((1,), (1,)), ((), ())),
                                preferred_element_type=jnp.float32)  # (BN, N)
        s = jnp.exp(jnp.clip(s, -5.0, 5.0)) * adj                 # mask to edges
        z = jnp.sum(s, axis=-1, keepdims=True)                    # (BN, 1) f32
        wv = jnp.dot(s.astype(jnp.bfloat16), vh,
                     preferred_element_type=jnp.float32)          # (BN, dh)
        head_outs.append(wv * pl.reciprocal(z + 1e-6, approx=True))
    attn = jnp.concatenate(head_outs, axis=-1)                    # (BN, dout)

    # ---- O projection + residual + LayerNorm 1 ------------------------------
    x = jnp.dot(attn.astype(jnp.bfloat16), wo_ref[...],
                preferred_element_type=jnp.float32) + bo_ref[...]
    if residual:
        x = x + hb
    mu = jnp.mean(x, axis=-1, keepdims=True)
    xc = x - mu
    var = jnp.mean(xc * xc, axis=-1, keepdims=True)
    y1 = xc * jax.lax.rsqrt(var + eps) * ln1g_ref[...] + ln1b_ref[...]

    # ---- FFN + residual + LayerNorm 2 ----------------------------------------
    f = jnp.dot(y1.astype(jnp.bfloat16), w1_ref[...],
                preferred_element_type=jnp.float32) + b1_ref[...]
    f = jnp.maximum(f, 0.0)
    g = jnp.dot(f.astype(jnp.bfloat16), w2_ref[...],
                preferred_element_type=jnp.float32) + b2_ref[...]
    if residual:
        g = g + y1
    mu2 = jnp.mean(g, axis=-1, keepdims=True)
    gc = g - mu2
    var2 = jnp.mean(gc * gc, axis=-1, keepdims=True)
    y2 = gc * jax.lax.rsqrt(var2 + eps) * ln2g_ref[...] + ln2b_ref[...]

    o_ref[...] = y2.astype(o_ref.dtype)


def _full2d(shape):
    return pl.BlockSpec(shape, lambda i: (0, 0))


def transformer_layer(h, adj, lp, *, num_heads, block_rows):
    n, d = h.shape
    dout = lp["wq"].shape[1]
    assert n % block_rows == 0
    nb = n // block_rows
    residual = (d == dout)   # benchmarking-gnns disables residual if dims differ

    weight_args = (lp["wq"], lp["wkv"], lp["wo"], lp["bo"],
                   lp["ln1_g"], lp["ln1_b"],
                   lp["w1"], lp["b1"], lp["w2"], lp["b2"],
                   lp["ln2_g"], lp["ln2_b"])

    kernel = functools.partial(_layer_kernel, num_heads=num_heads,
                               residual=residual, eps=1e-5)
    return pl.pallas_call(
        kernel,
        out_shape=jax.ShapeDtypeStruct((n, dout), jnp.float32),
        grid=(nb,),
        in_specs=[
            pl.BlockSpec((block_rows, d), lambda i: (i, 0)),   # h: dst block
            pl.BlockSpec((n, d), lambda i: (0, 0)),            # h: all sources
            pl.BlockSpec((block_rows, n), lambda i: (i, 0)),   # adj rows
        ] + [_full2d(w.shape) for w in weight_args],
        out_specs=pl.BlockSpec((block_rows, dout), lambda i: (i, 0)),
        compiler_params=pltpu.CompilerParams(
            dimension_semantics=("parallel",)),                # 2 TCs on v7x
    )(h, h, adj, *weight_args)


# ---------------------------------------------------------------------------
# Fused MLPReadout kernel (out -> out/2 -> out/4 -> n_classes)
# ---------------------------------------------------------------------------

def _mlp_kernel(h_ref, w0_ref, b0_ref, w1_ref, b1_ref, w2_ref, b2_ref, o_ref):
    y = jnp.dot(h_ref[...].astype(jnp.bfloat16), w0_ref[...],
                preferred_element_type=jnp.float32) + b0_ref[...]
    y = jnp.maximum(y, 0.0)
    y = jnp.dot(y.astype(jnp.bfloat16), w1_ref[...],
                preferred_element_type=jnp.float32) + b1_ref[...]
    y = jnp.maximum(y, 0.0)
    y = jnp.dot(y.astype(jnp.bfloat16), w2_ref[...],
                preferred_element_type=jnp.float32) + b2_ref[...]
    o_ref[...] = y.astype(o_ref.dtype)


def mlp_readout(h, mlp, *, block_rows):
    n, d = h.shape
    n_classes = mlp[2]["w"].shape[1]
    assert n % block_rows == 0
    nb = n // block_rows
    args = (mlp[0]["w"], mlp[0]["b"], mlp[1]["w"], mlp[1]["b"],
            mlp[2]["w"], mlp[2]["b"])
    return pl.pallas_call(
        _mlp_kernel,
        out_shape=jax.ShapeDtypeStruct((n, n_classes), jnp.float32),
        grid=(nb,),
        in_specs=[pl.BlockSpec((block_rows, d), lambda i: (i, 0))]
                 + [_full2d(w.shape) for w in args],
        out_specs=pl.BlockSpec((block_rows, n_classes), lambda i: (i, 0)),
        compiler_params=pltpu.CompilerParams(
            dimension_semantics=("parallel",)),
    )(h, *args)


# ---------------------------------------------------------------------------
# Parameters (deterministic, in-script)
# ---------------------------------------------------------------------------

def init_params(key, in_dim, hidden, out_dim, heads, n_layers, n_classes):
    keys = [key]

    def nxt():
        keys[0], sub = jax.random.split(keys[0])
        return sub

    def w_init(din, dout):
        return (jax.random.normal(nxt(), (din, dout), jnp.float32)
                / jnp.sqrt(float(din)))

    def b_init(dout):
        return jax.random.normal(nxt(), (1, dout), jnp.float32) * 0.01

    params = {"emb_h": jax.random.normal(nxt(), (in_dim, hidden),
                                         jnp.float32) * 0.1}

    layers = []
    for l in range(n_layers):
        dout = hidden if l < n_layers - 1 else out_dim
        dh = dout // heads
        wq = w_init(hidden, dout) * (1.0 / math.sqrt(dh))   # fold 1/sqrt(dh)
        wk = w_init(hidden, dout)
        wv = w_init(hidden, dout)
        layers.append({
            "wq": wq.astype(jnp.bfloat16),
            "wkv": jnp.concatenate([wk, wv], axis=1).astype(jnp.bfloat16),
            "wo": w_init(dout, dout).astype(jnp.bfloat16),
            "bo": b_init(dout),
            "ln1_g": jnp.ones((1, dout), jnp.float32),
            "ln1_b": jnp.zeros((1, dout), jnp.float32),
            "w1": w_init(dout, dout * 2).astype(jnp.bfloat16),
            "b1": b_init(dout * 2),
            "w2": w_init(dout * 2, dout).astype(jnp.bfloat16),
            "b2": b_init(dout),
            "ln2_g": jnp.ones((1, dout), jnp.float32),
            "ln2_b": jnp.zeros((1, dout), jnp.float32),
        })
    params["layers"] = layers

    # MLPReadout(out_dim, n_classes, L=2): out -> out/2 -> out/4 -> n_classes
    params["mlp"] = [
        {"w": w_init(out_dim, out_dim // 2).astype(jnp.bfloat16),
         "b": b_init(out_dim // 2)},
        {"w": w_init(out_dim // 2, out_dim // 4).astype(jnp.bfloat16),
         "b": b_init(out_dim // 4)},
        {"w": w_init(out_dim // 4, n_classes).astype(jnp.bfloat16),
         "b": b_init(n_classes)},
    ]
    return params


# ---------------------------------------------------------------------------
# Forward pass (glue in plain JAX, hot path in 1 fused Pallas kernel per layer)
# ---------------------------------------------------------------------------

def _pick_block_rows(n):
    # Two "parallel" dst-node blocks when alignment allows (engages both v7x
    # TensorCores); otherwise a single block.
    half = n // 2
    return half if (n % 2 == 0 and half % 8 == 0) else n


def graph_transformer_forward(params, feat_int, adj, *, num_heads):
    # embedding_h: integer node labels -> hidden  (glue gather, not a kernel)
    h = jnp.take(params["emb_h"], feat_int, axis=0)           # (N, hidden) f32
    # in_feat_dropout / dropout layers: identity at inference
    n = h.shape[0]
    block_rows = _pick_block_rows(n)

    for lp in params["layers"]:
        h = transformer_layer(h, adj, lp, num_heads=num_heads,
                              block_rows=block_rows)

    return mlp_readout(h, params["mlp"], block_rows=block_rows)  # (N, classes)


# ---------------------------------------------------------------------------
# Demo
# ---------------------------------------------------------------------------

if __name__ == "__main__":
    N = 64            # nodes
    IN_DIM = 8        # node label vocabulary (SBM)
    HIDDEN = 32
    OUT_DIM = 32
    HEADS = 4
    LAYERS = 2
    N_CLASSES = 4

    key = jax.random.PRNGKey(0)
    kp, kf, ka = jax.random.split(key, 3)

    params = init_params(kp, IN_DIM, HIDDEN, OUT_DIM, HEADS, LAYERS, N_CLASSES)

    # integer node features (g.ndata['feat'] for SBM graphs)
    feat = jax.random.randint(kf, (N,), 0, IN_DIM, dtype=jnp.int32)

    # deterministic symmetric adjacency with self loops, adj[dst, src]
    r = jax.random.uniform(ka, (N, N))
    adj = (r < 0.15).astype(jnp.float32)
    adj = jnp.maximum(adj, adj.T)
    adj = jnp.maximum(adj, jnp.eye(N, dtype=jnp.float32))

    fwd = jax.jit(functools.partial(graph_transformer_forward,
                                    num_heads=HEADS))
    out = jax.block_until_ready(fwd(params, feat, adj))

    assert out.shape == (N, N_CLASSES), out.shape
    assert bool(jnp.all(jnp.isfinite(out)))
    print("KERNEL_OK")
</pallas_src>

<mosaic_0001>
module attributes {stable_mosaic.version = 11 : i64} {
  func.func @_mlp_kernel(%arg0: i32, %arg1: memref<32x32xf32, #tpu.memory_space<vmem>>, %arg2: memref<32x16xbf16, #tpu.memory_space<vmem>>, %arg3: memref<1x16xf32, #tpu.memory_space<vmem>>, %arg4: memref<16x8xbf16, #tpu.memory_space<vmem>>, %arg5: memref<1x8xf32, #tpu.memory_space<vmem>>, %arg6: memref<8x4xbf16, #tpu.memory_space<vmem>>, %arg7: memref<1x4xf32, #tpu.memory_space<vmem>>, %arg8: memref<32x4xf32, #tpu.memory_space<vmem>>) attributes {dimension_semantics = [#tpu.dimension_semantics<parallel>], iteration_bounds = array<i64: 2>, scalar_prefetch = 0 : i64, scratch_operands = 0 : i64, tpu.core_type = #tpu.core_type<tc>, window_params = [{transform_indices = @transform_0, window_bounds = array<i64: 32, 32>}, {pipeline_mode = #tpu.pipeline_mode<synchronous>, transform_indices = @transform_1, window_bounds = array<i64: 32, 16>}, {pipeline_mode = #tpu.pipeline_mode<synchronous>, transform_indices = @transform_2, window_bounds = array<i64: 1, 16>}, {pipeline_mode = #tpu.pipeline_mode<synchronous>, transform_indices = @transform_3, window_bounds = array<i64: 16, 8>}, {pipeline_mode = #tpu.pipeline_mode<synchronous>, transform_indices = @transform_4, window_bounds = array<i64: 1, 8>}, {pipeline_mode = #tpu.pipeline_mode<synchronous>, transform_indices = @transform_5, window_bounds = array<i64: 8, 4>}, {pipeline_mode = #tpu.pipeline_mode<synchronous>, transform_indices = @transform_6, window_bounds = array<i64: 1, 4>}, {transform_indices = @transform_7, window_bounds = array<i64: 32, 4>}]} {
    %c0 = arith.constant 0 : index
    %c0_0 = arith.constant 0 : index
    %0 = vector.load %arg1[%c0, %c0_0] : memref<32x32xf32, #tpu.memory_space<vmem>>, vector<32x32xf32>
    %1 = arith.truncf %0 : vector<32x32xf32> to vector<32x32xbf16>
    %c0_1 = arith.constant 0 : index
    %c0_2 = arith.constant 0 : index
    %2 = vector.load %arg2[%c0_1, %c0_2] : memref<32x16xbf16, #tpu.memory_space<vmem>>, vector<32x16xbf16>
    %cst = arith.constant dense<0.000000e+00> : vector<32x16xf32>
    %3 = tpu.matmul %1, %2, %cst {dimension_numbers = #tpu.dot_dimension_numbers<[1], [0], [0], [1], [0, 0, 1, 1], [], []>} : vector<32x32xbf16>, vector<32x16xbf16>, vector<32x16xf32> -> vector<32x16xf32>
    %c0_3 = arith.constant 0 : index
    %c0_4 = arith.constant 0 : index
    %4 = vector.load %arg3[%c0_3, %c0_4] : memref<1x16xf32, #tpu.memory_space<vmem>>, vector<1x16xf32>
    %5 = vector.broadcast %4 : vector<1x16xf32> to vector<32x16xf32>
    %6 = arith.addf %3, %5 : vector<32x16xf32>
    %cst_5 = arith.constant 0.000000e+00 : f32
    %7 = vector.broadcast %cst_5 : f32 to vector<32x16xf32>
    %8 = arith.maximumf %6, %7 : vector<32x16xf32>
    %9 = arith.truncf %8 : vector<32x16xf32> to vector<32x16xbf16>
    %c0_6 = arith.constant 0 : index
    %c0_7 = arith.constant 0 : index
    %10 = vector.load %arg4[%c0_6, %c0_7] : memref<16x8xbf16, #tpu.memory_space<vmem>>, vector<16x8xbf16>
    %cst_8 = arith.constant dense<0.000000e+00> : vector<32x8xf32>
    %11 = tpu.matmul %9, %10, %cst_8 {dimension_numbers = #tpu.dot_dimension_numbers<[1], [0], [0], [1], [0, 0, 1, 1], [], []>} : vector<32x16xbf16>, vector<16x8xbf16>, vector<32x8xf32> -> vector<32x8xf32>
    %c0_9 = arith.constant 0 : index
    %c0_10 = arith.constant 0 : index
    %12 = vector.load %arg5[%c0_9, %c0_10] : memref<1x8xf32, #tpu.memory_space<vmem>>, vector<1x8xf32>
    %13 = vector.broadcast %12 : vector<1x8xf32> to vector<32x8xf32>
    %14 = arith.addf %11, %13 : vector<32x8xf32>
    %cst_11 = arith.constant 0.000000e+00 : f32
    %15 = vector.broadcast %cst_11 : f32 to vector<32x8xf32>
    %16 = arith.maximumf %14, %15 : vector<32x8xf32>
    %17 = arith.truncf %16 : vector<32x8xf32> to vector<32x8xbf16>
    %c0_12 = arith.constant 0 : index
    %c0_13 = arith.constant 0 : index
    %18 = vector.load %arg6[%c0_12, %c0_13] : memref<8x4xbf16, #tpu.memory_space<vmem>>, vector<8x4xbf16>
    %cst_14 = arith.constant dense<0.000000e+00> : vector<32x4xf32>
    %19 = tpu.matmul %17, %18, %cst_14 {dimension_numbers = #tpu.dot_dimension_numbers<[1], [0], [0], [1], [0, 0, 1, 1], [], []>} : vector<32x8xbf16>, vector<8x4xbf16>, vector<32x4xf32> -> vector<32x4xf32>
    %c0_15 = arith.constant 0 : index
    %c0_16 = arith.constant 0 : index
    %20 = vector.load %arg7[%c0_15, %c0_16] : memref<1x4xf32, #tpu.memory_space<vmem>>, vector<1x4xf32>
    %21 = vector.broadcast %20 : vector<1x4xf32> to vector<32x4xf32>
    %22 = arith.addf %19, %21 : vector<32x4xf32>
    %c0_17 = arith.constant 0 : index
    %c0_18 = arith.constant 0 : index
    %23 = vector.load %arg8[%c0_17, %c0_18] : memref<32x4xf32, #tpu.memory_space<vmem>>, vector<32x4xf32>
    tpu.vector_store %arg8[%c0_17, %c0_18], %22 {strides = array<i32>} : memref<32x4xf32, #tpu.memory_space<vmem>>, vector<32x4xf32>,
    return
  }
  func.func @transform_0(%arg0: i32) -> (i32, i32) {
    %c0_i32 = arith.constant 0 : i32
    %c0_i32_0 = arith.constant 0 : i32
    return %arg0, %c0_i32 : i32, i32
  }
  func.func @transform_1(%arg0: i32) -> (i32, i32) {
    %c0_i32 = arith.constant 0 : i32
    %c0_i32_0 = arith.constant 0 : i32
    %c0_i32_1 = arith.constant 0 : i32
    return %c0_i32, %c0_i32_0 : i32, i32
  }
  func.func @transform_2(%arg0: i32) -> (i32, i32) {
    %c0_i32 = arith.constant 0 : i32
    %c0_i32_0 = arith.constant 0 : i32
    %c0_i32_1 = arith.constant 0 : i32
    return %c0_i32, %c0_i32_0 : i32, i32
  }
  func.func @transform_3(%arg0: i32) -> (i32, i32) {
    %c0_i32 = arith.constant 0 : i32
    %c0_i32_0 = arith.constant 0 : i32
    %c0_i32_1 = arith.constant 0 : i32
    return %c0_i32, %c0_i32_0 : i32, i32
  }
  func.func @transform_4(%arg0: i32) -> (i32, i32) {
    %c0_i32 = arith.constant 0 : i32
    %c0_i32_0 = arith.constant 0 : i32
    %c0_i32_1 = arith.constant 0 : i32
    return %c0_i32, %c0_i32_0 : i32, i32
  }
  func.func @transform_5(%arg0: i32) -> (i32, i32) {
    %c0_i32 = arith.constant 0 : i32
    %c0_i32_0 = arith.constant 0 : i32
    %c0_i32_1 = arith.constant 0 : i32
    return %c0_i32, %c0_i32_0 : i32, i32
  }
  func.func @transform_6(%arg0: i32) -> (i32, i32) {
    %c0_i32 = arith.constant 0 : i32
    %c0_i32_0 = arith.constant 0 : i32
    %c0_i32_1 = arith.constant 0 : i32
    return %c0_i32, %c0_i32_0 : i32, i32
  }
  func.func @transform_7(%arg0: i32) -> (i32, i32) {
    %c0_i32 = arith.constant 0 : i32
    %c0_i32_0 = arith.constant 0 : i32
    return %arg0, %c0_i32 : i32, i32
  }
}

module attributes {stable_mosaic.version = 11 : i64} {
  func.func @_layer_kernel(%arg0: i32, %arg1: memref<32x32xf32, #tpu.memory_space<vmem>>, %arg2: memref<64x32xf32, #tpu.memory_space<vmem>>, %arg3: memref<32x64xf32, #tpu.memory_space<vmem>>, %arg4: memref<32x32xbf16, #tpu.memory_space<vmem>>, %arg5: memref<32x64xbf16, #tpu.memory_space<vmem>>, %arg6: memref<32x32xbf16, #tpu.memory_space<vmem>>, %arg7: memref<1x32xf32, #tpu.memory_space<vmem>>, %arg8: memref<1x32xf32, #tpu.memory_space<vmem>>, %arg9: memref<1x32xf32, #tpu.memory_space<vmem>>, %arg10: memref<32x64xbf16, #tpu.memory_space<vmem>>, %arg11: memref<1x64xf32, #tpu.memory_space<vmem>>, %arg12: memref<64x32xbf16, #tpu.memory_space<vmem>>, %arg13: memref<1x32xf32, #tpu.memory_space<vmem>>, %arg14: memref<1x32xf32, #tpu.memory_space<vmem>>, %arg15: memref<1x32xf32, #tpu.memory_space<vmem>>, %arg16: memref<32x32xf32, #tpu.memory_space<vmem>>) attributes {dimension_semantics = [#tpu.dimension_semantics<parallel>], iteration_bounds = array<i64: 2>, scalar_prefetch = 0 : i64, scratch_operands = 0 : i64, tpu.core_type = #tpu.core_type<tc>, window_params = [{transform_indices = @transform_0, window_bounds = array<i64: 32, 32>}, {pipeline_mode = #tpu.pipeline_mode<synchronous>, transform_indices = @transform_1, window_bounds = array<i64: 64, 32>}, {transform_indices = @transform_2, window_bounds = array<i64: 32, 64>}, {pipeline_mode = #tpu.pipeline_mode<synchronous>, transform_indices = @transform_3, window_bounds = array<i64: 32, 32>}, {pipeline_mode = #tpu.pipeline_mode<synchronous>, transform_indices = @transform_4, window_bounds = array<i64: 32, 64>}, {pipeline_mode = #tpu.pipeline_mode<synchronous>, transform_indices = @transform_5, window_bounds = array<i64: 32, 32>}, {pipeline_mode = #tpu.pipeline_mode<synchronous>, transform_indices = @transform_6, window_bounds = array<i64: 1, 32>}, {pipeline_mode = #tpu.pipeline_mode<synchronous>, transform_indices = @transform_7, window_bounds = array<i64: 1, 32>}, {pipeline_mode = #tpu.pipeline_mode<synchronous>, transform_indices = @transform_8, window_bounds = array<i64: 1, 32>}, {pipeline_mode = #tpu.pipeline_mode<synchronous>, transform_indices = @transform_9, window_bounds = array<i64: 32, 64>}, {pipeline_mode = #tpu.pipeline_mode<synchronous>, transform_indices = @transform_10, window_bounds = array<i64: 1, 64>}, {pipeline_mode = #tpu.pipeline_mode<synchronous>, transform_indices = @transform_11, window_bounds = array<i64: 64, 32>}, {pipeline_mode = #tpu.pipeline_mode<synchronous>, transform_indices = @transform_12, window_bounds = array<i64: 1, 32>}, {pipeline_mode = #tpu.pipeline_mode<synchronous>, transform_indices = @transform_13, window_bounds = array<i64: 1, 32>}, {pipeline_mode = #tpu.pipeline_mode<synchronous>, transform_indices = @transform_14, window_bounds = array<i64: 1, 32>}, {transform_indices = @transform_15, window_bounds = array<i64: 32, 32>}]} {
    %c0 = arith.constant 0 : index
    %c0_0 = arith.constant 0 : index
    %0 = vector.load %arg1[%c0, %c0_0] : memref<32x32xf32, #tpu.memory_space<vmem>>, vector<32x32xf32>
    %c0_1 = arith.constant 0 : index
    %c0_2 = arith.constant 0 : index
    %1 = vector.load %arg2[%c0_1, %c0_2] : memref<64x32xf32, #tpu.memory_space<vmem>>, vector<64x32xf32>
    %c0_3 = arith.constant 0 : index
    %c0_4 = arith.constant 0 : index
    %2 = vector.load %arg3[%c0_3, %c0_4] : memref<32x64xf32, #tpu.memory_space<vmem>>, vector<32x64xf32>
    %3 = arith.truncf %0 : vector<32x32xf32> to vector<32x32xbf16>
    %c0_5 = arith.constant 0 : index
    %c0_6 = arith.constant 0 : index
    %4 = vector.load %arg4[%c0_5, %c0_6] : memref<32x32xbf16, #tpu.memory_space<vmem>>, vector<32x32xbf16>
    %cst = arith.constant dense<0.000000e+00> : vector<32x32xf32>
    %5 = tpu.matmul %3, %4, %cst {dimension_numbers = #tpu.dot_dimension_numbers<[1], [0], [0], [1], [0, 0, 1, 1], [], []>} : vector<32x32xbf16>, vector<32x32xbf16>, vector<32x32xf32> -> vector<32x32xf32>
    %6 = arith.truncf %1 : vector<64x32xf32> to vector<64x32xbf16>
    %c0_7 = arith.constant 0 : index
    %c0_8 = arith.constant 0 : index
    %7 = vector.load %arg5[%c0_7, %c0_8] : memref<32x64xbf16, #tpu.memory_space<vmem>>, vector<32x64xbf16>
    %cst_9 = arith.constant dense<0.000000e+00> : vector<64x64xf32>
    %8 = tpu.matmul %6, %7, %cst_9 {dimension_numbers = #tpu.dot_dimension_numbers<[1], [0], [0], [1], [0, 0, 1, 1], [], []>} : vector<64x32xbf16>, vector<32x64xbf16>, vector<64x64xf32> -> vector<64x64xf32>
    %9 = vector.extract_strided_slice %5 {offsets = [0, 0], sizes = [32, 8], strides = [1, 1]} : vector<32x32xf32> to vector<32x8xf32>
    %10 = arith.truncf %9 : vector<32x8xf32> to vector<32x8xbf16>
    %11 = vector.extract_strided_slice %8 {offsets = [0, 0], sizes = [64, 8], strides = [1, 1]} : vector<64x64xf32> to vector<64x8xf32>
    %12 = arith.truncf %11 : vector<64x8xf32> to vector<64x8xbf16>
    %13 = vector.extract_strided_slice %8 {offsets = [0, 32], sizes = [64, 8], strides = [1, 1]} : vector<64x64xf32> to vector<64x8xf32>
    %14 = arith.truncf %13 : vector<64x8xf32> to vector<64x8xbf16>
    %cst_10 = arith.constant dense<0.000000e+00> : vector<32x64xf32>
    %15 = tpu.matmul %10, %12, %cst_10 {dimension_numbers = #tpu.dot_dimension_numbers<[1], [1], [0], [0], [0, 0, 1, 0], [], []>} : vector<32x8xbf16>, vector<64x8xbf16>, vector<32x64xf32> -> vector<32x64xf32>
    %cst_11 = arith.constant -5.000000e+00 : f32
    %cst_12 = arith.constant 5.000000e+00 : f32
    %16 = vector.broadcast %cst_11 : f32 to vector<32x64xf32>
    %17 = arith.maximumf %16, %15 : vector<32x64xf32>
    %18 = vector.broadcast %cst_12 : f32 to vector<32x64xf32>
    %19 = arith.minimumf %18, %17 : vector<32x64xf32>
    %20 = math.exp %19 : vector<32x64xf32>
    %21 = arith.mulf %20, %2 : vector<32x64xf32>
    %cst_13 = arith.constant dense<0.000000e+00> : vector<32xf32>
    %22 = vector.multi_reduction <add>, %21, %cst_13 [1] : vector<32x64xf32> to vector<32xf32>
    %23 = vector.shape_cast %22 : vector<32xf32> to vector<32x1xf32>
    %24 = arith.truncf %21 : vector<32x64xf32> to vector<32x64xbf16>
    %cst_14 = arith.constant dense<0.000000e+00> : vector<32x8xf32>
    %25 = tpu.matmul %24, %14, %cst_14 {dimension_numbers = #tpu.dot_dimension_numbers<[1], [0], [0], [1], [0, 0, 1, 1], [], []>} : vector<32x64xbf16>, vector<64x8xbf16>, vector<32x8xf32> -> vector<32x8xf32>
    %cst_15 = arith.constant 9.99999997E-7 : f32
    %26 = vector.broadcast %cst_15 : f32 to vector<32x1xf32>
    %27 = arith.addf %23, %26 : vector<32x1xf32>
    %28 = tpu.reciprocal %27 {approx = true} : vector<32x1xf32> -> vector<32x1xf32>
    %29 = vector.broadcast %28 : vector<32x1xf32> to vector<32x8xf32>
    %30 = arith.mulf %25, %29 : vector<32x8xf32>
    %31 = vector.extract_strided_slice %5 {offsets = [0, 8], sizes = [32, 8], strides = [1, 1]} : vector<32x32xf32> to vector<32x8xf32>
    %32 = arith.truncf %31 : vector<32x8xf32> to vector<32x8xbf16>
    %33 = vector.extract_strided_slice %8 {offsets = [0, 8], sizes = [64, 8], strides = [1, 1]} : vector<64x64xf32> to vector<64x8xf32>
    %34 = arith.truncf %33 : vector<64x8xf32> to vector<64x8xbf16>
    %35 = vector.extract_strided_slice %8 {offsets = [0, 40], sizes = [64, 8], strides = [1, 1]} : vector<64x64xf32> to vector<64x8xf32>
    %36 = arith.truncf %35 : vector<64x8xf32> to vector<64x8xbf16>
    %cst_16 = arith.constant dense<0.000000e+00> : vector<32x64xf32>
    %37 = tpu.matmul %32, %34, %cst_16 {dimension_numbers = #tpu.dot_dimension_numbers<[1], [1], [0], [0], [0, 0, 1, 0], [], []>} : vector<32x8xbf16>, vector<64x8xbf16>, vector<32x64xf32> -> vector<32x64xf32>
    %cst_17 = arith.constant -5.000000e+00 : f32
    %cst_18 = arith.constant 5.000000e+00 : f32
    %38 = vector.broadcast %cst_17 : f32 to vector<32x64xf32>
    %39 = arith.maximumf %38, %37 : vector<32x64xf32>
    %40 = vector.broadcast %cst_18 : f32 to vector<32x64xf32>
    %41 = arith.minimumf %40, %39 : vector<32x64xf32>
    %42 = math.exp %41 : vector<32x64xf32>
    %43 = arith.mulf %42, %2 : vector<32x64xf32>
    %cst_19 = arith.constant dense<0.000000e+00> : vector<32xf32>
    %44 = vector.multi_reduction <add>, %43, %cst_19 [1] : vector<32x64xf32> to vector<32xf32>
    %45 = vector.shape_cast %44 : vector<32xf32> to vector<32x1xf32>
    %46 = arith.truncf %43 : vector<32x64xf32> to vector<32x64xbf16>
    %cst_20 = arith.constant dense<0.000000e+00> : vector<32x8xf32>
    %47 = tpu.matmul %46, %36, %cst_20 {dimension_numbers = #tpu.dot_dimension_numbers<[1], [0], [0], [1], [0, 0, 1, 1], [], []>} : vector<32x64xbf16>, vector<64x8xbf16>, vector<32x8xf32> -> vector<32x8xf32>
    %cst_21 = arith.constant 9.99999997E-7 : f32
    %48 = vector.broadcast %cst_21 : f32 to vector<32x1xf32>
    %49 = arith.addf %45, %48 : vector<32x1xf32>
    %50 = tpu.reciprocal %49 {approx = true} : vector<32x1xf32> -> vector<32x1xf32>
    %51 = vector.broadcast %50 : vector<32x1xf32> to vector<32x8xf32>
    %52 = arith.mulf %47, %51 : vector<32x8xf32>
    %53 = vector.extract_strided_slice %5 {offsets = [0, 16], sizes = [32, 8], strides = [1, 1]} : vector<32x32xf32> to vector<32x8xf32>
    %54 = arith.truncf %53 : vector<32x8xf32> to vector<32x8xbf16>
    %55 = vector.extract_strided_slice %8 {offsets = [0, 16], sizes = [64, 8], strides = [1, 1]} : vector<64x64xf32> to vector<64x8xf32>
    %56 = arith.truncf %55 : vector<64x8xf32> to vector<64x8xbf16>
    %57 = vector.extract_strided_slice %8 {offsets = [0, 48], sizes = [64, 8], strides = [1, 1]} : vector<64x64xf32> to vector<64x8xf32>
    %58 = arith.truncf %57 : vector<64x8xf32> to vector<64x8xbf16>
    %cst_22 = arith.constant dense<0.000000e+00> : vector<32x64xf32>
    %59 = tpu.matmul %54, %56, %cst_22 {dimension_numbers = #tpu.dot_dimension_numbers<[1], [1], [0], [0], [0, 0, 1, 0], [], []>} : vector<32x8xbf16>, vector<64x8xbf16>, vector<32x64xf32> -> vector<32x64xf32>
    %cst_23 = arith.constant -5.000000e+00 : f32
    %cst_24 = arith.constant 5.000000e+00 : f32
    %60 = vector.broadcast %cst_23 : f32 to vector<32x64xf32>
    %61 = arith.maximumf %60, %59 : vector<32x64xf32>
    %62 = vector.broadcast %cst_24 : f32 to vector<32x64xf32>
    %63 = arith.minimumf %62, %61 : vector<32x64xf32>
    %64 = math.exp %63 : vector<32x64xf32>
    %65 = arith.mulf %64, %2 : vector<32x64xf32>
    %cst_25 = arith.constant dense<0.000000e+00> : vector<32xf32>
    %66 = vector.multi_reduction <add>, %65, %cst_25 [1] : vector<32x64xf32> to vector<32xf32>
    %67 = vector.shape_cast %66 : vector<32xf32> to vector<32x1xf32>
    %68 = arith.truncf %65 : vector<32x64xf32> to vector<32x64xbf16>
    %cst_26 = arith.constant dense<0.000000e+00> : vector<32x8xf32>
    %69 = tpu.matmul %68, %58, %cst_26 {dimension_numbers = #tpu.dot_dimension_numbers<[1], [0], [0], [1], [0, 0, 1, 1], [], []>} : vector<32x64xbf16>, vector<64x8xbf16>, vector<32x8xf32> -> vector<32x8xf32>
    %cst_27 = arith.constant 9.99999997E-7 : f32
    %70 = vector.broadcast %cst_27 : f32 to vector<32x1xf32>
    %71 = arith.addf %67, %70 : vector<32x1xf32>
    %72 = tpu.reciprocal %71 {approx = true} : vector<32x1xf32> -> vector<32x1xf32>
    %73 = vector.broadcast %72 : vector<32x1xf32> to vector<32x8xf32>
    %74 = arith.mulf %69, %73 : vector<32x8xf32>
    %75 = vector.extract_strided_slice %5 {offsets = [0, 24], sizes = [32, 8], strides = [1, 1]} : vector<32x32xf32> to vector<32x8xf32>
    %76 = arith.truncf %75 : vector<32x8xf32> to vector<32x8xbf16>
    %77 = vector.extract_strided_slice %8 {offsets = [0, 24], sizes = [64, 8], strides = [1, 1]} : vector<64x64xf32> to vector<64x8xf32>
    %78 = arith.truncf %77 : vector<64x8xf32> to vector<64x8xbf16>
    %79 = vector.extract_strided_slice %8 {offsets = [0, 56], sizes = [64, 8], strides = [1, 1]} : vector<64x64xf32> to vector<64x8xf32>
    %80 = arith.truncf %79 : vector<64x8xf32> to vector<64x8xbf16>
    %cst_28 = arith.constant dense<0.000000e+00> : vector<32x64xf32>
    %81 = tpu.matmul %76, %78, %cst_28 {dimension_numbers = #tpu.dot_dimension_numbers<[1], [1], [0], [0], [0, 0, 1, 0], [], []>} : vector<32x8xbf16>, vector<64x8xbf16>, vector<32x64xf32> -> vector<32x64xf32>
    %cst_29 = arith.constant -5.000000e+00 : f32
    %cst_30 = arith.constant 5.000000e+00 : f32
    %82 = vector.broadcast %cst_29 : f32 to vector<32x64xf32>
    %83 = arith.maximumf %82, %81 : vector<32x64xf32>
    %84 = vector.broadcast %cst_30 : f32 to vector<32x64xf32>
    %85 = arith.minimumf %84, %83 : vector<32x64xf32>
    %86 = math.exp %85 : vector<32x64xf32>
    %87 = arith.mulf %86, %2 : vector<32x64xf32>
    %cst_31 = arith.constant dense<0.000000e+00> : vector<32xf32>
    %88 = vector.multi_reduction <add>, %87, %cst_31 [1] : vector<32x64xf32> to vector<32xf32>
    %89 = vector.shape_cast %88 : vector<32xf32> to vector<32x1xf32>
    %90 = arith.truncf %87 : vector<32x64xf32> to vector<32x64xbf16>
    %cst_32 = arith.constant dense<0.000000e+00> : vector<32x8xf32>
    %91 = tpu.matmul %90, %80, %cst_32 {dimension_numbers = #tpu.dot_dimension_numbers<[1], [0], [0], [1], [0, 0, 1, 1], [], []>} : vector<32x64xbf16>, vector<64x8xbf16>, vector<32x8xf32> -> vector<32x8xf32>
    %cst_33 = arith.constant 9.99999997E-7 : f32
    %92 = vector.broadcast %cst_33 : f32 to vector<32x1xf32>
    %93 = arith.addf %89, %92 : vector<32x1xf32>
    %94 = tpu.reciprocal %93 {approx = true} : vector<32x1xf32> -> vector<32x1xf32>
    %95 = vector.broadcast %94 : vector<32x1xf32> to vector<32x8xf32>
    %96 = arith.mulf %91, %95 : vector<32x8xf32>
    %97 = tpu.concatenate %30, %52, %74, %96 in 1 : vector<32x8xf32>, vector<32x8xf32>, vector<32x8xf32>, vector<32x8xf32> -> vector<32x32xf32>
    %98 = arith.truncf %97 : vector<32x32xf32> to vector<32x32xbf16>
    %c0_34 = arith.constant 0 : index
    %c0_35 = arith.constant 0 : index
    %99 = vector.load %arg6[%c0_34, %c0_35] : memref<32x32xbf16, #tpu.memory_space<vmem>>, vector<32x32xbf16>
    %cst_36 = arith.constant dense<0.000000e+00> : vector<32x32xf32>
    %100 = tpu.matmul %98, %99, %cst_36 {dimension_numbers = #tpu.dot_dimension_numbers<[1], [0], [0], [1], [0, 0, 1, 1], [], []>} : vector<32x32xbf16>, vector<32x32xbf16>, vector<32x32xf32> -> vector<32x32xf32>
    %c0_37 = arith.constant 0 : index
    %c0_38 = arith.constant 0 : index
    %101 = vector.load %arg7[%c0_37, %c0_38] : memref<1x32xf32, #tpu.memory_space<vmem>>, vector<1x32xf32>
    %102 = vector.broadcast %101 : vector<1x32xf32> to vector<32x32xf32>
    %103 = arith.addf %100, %102 : vector<32x32xf32>
    %104 = arith.addf %103, %0 : vector<32x32xf32>
    %cst_39 = arith.constant dense<0.000000e+00> : vector<32xf32>
    %105 = vector.multi_reduction <add>, %104, %cst_39 [1] : vector<32x32xf32> to vector<32xf32>
    %106 = vector.shape_cast %105 : vector<32xf32> to vector<32x1xf32>
    %cst_40 = arith.constant 3.200000e+01 : f32
    %107 = vector.broadcast %cst_40 : f32 to vector<32x1xf32>
    %108 = arith.divf %106, %107 : vector<32x1xf32>
    %109 = vector.broadcast %108 : vector<32x1xf32> to vector<32x32xf32>
    %110 = arith.subf %104, %109 : vector<32x32xf32>
    %111 = arith.mulf %110, %110 : vector<32x32xf32>
    %cst_41 = arith.constant dense<0.000000e+00> : vector<32xf32>
    %112 = vector.multi_reduction <add>, %111, %cst_41 [1] : vector<32x32xf32> to vector<32xf32>
    %113 = vector.shape_cast %112 : vector<32xf32> to vector<32x1xf32>
    %cst_42 = arith.constant 3.200000e+01 : f32
    %114 = vector.broadcast %cst_42 : f32 to vector<32x1xf32>
    %115 = arith.divf %113, %114 : vector<32x1xf32>
    %cst_43 = arith.constant 9.99999974E-6 : f32
    %116 = vector.broadcast %cst_43 : f32 to vector<32x1xf32>
    %117 = arith.addf %115, %116 : vector<32x1xf32>
    %118 = math.rsqrt %117 : vector<32x1xf32>
    %119 = vector.broadcast %118 : vector<32x1xf32> to vector<32x32xf32>
    %120 = arith.mulf %110, %119 : vector<32x32xf32>
    %c0_44 = arith.constant 0 : index
    %c0_45 = arith.constant 0 : index
    %121 = vector.load %arg8[%c0_44, %c0_45] : memref<1x32xf32, #tpu.memory_space<vmem>>, vector<1x32xf32>
    %122 = vector.broadcast %121 : vector<1x32xf32> to vector<32x32xf32>
    %123 = arith.mulf %120, %122 : vector<32x32xf32>
    %c0_46 = arith.constant 0 : index
    %c0_47 = arith.constant 0 : index
    %124 = vector.load %arg9[%c0_46, %c0_47] : memref<1x32xf32, #tpu.memory_space<vmem>>, vector<1x32xf32>
    %125 = vector.broadcast %124 : vector<1x32xf32> to vector<32x32xf32>
    %126 = arith.addf %123, %125 : vector<32x32xf32>
    %127 = arith.truncf %126 : vector<32x32xf32> to vector<32x32xbf16>
    %c0_48 = arith.constant 0 : index
    %c0_49 = arith.constant 0 : index
    %128 = vector.load %arg10[%c0_48, %c0_49] : memref<32x64xbf16, #tpu.memory_space<vmem>>, vector<32x64xbf16>
    %cst_50 = arith.constant dense<0.000000e+00> : vector<32x64xf32>
    %129 = tpu.matmul %127, %128, %cst_50 {dimension_numbers = #tpu.dot_dimension_numbers<[1], [0], [0], [1], [0, 0, 1, 1], [], []>} : vector<32x32xbf16>, vector<32x64xbf16>, vector<32x64xf32> -> vector<32x64xf32>
    %c0_51 = arith.constant 0 : index
    %c0_52 = arith.constant 0 : index
    %130 = vector.load %arg11[%c0_51, %c0_52] : memref<1x64xf32, #tpu.memory_space<vmem>>, vector<1x64xf32>
    %131 = vector.broadcast %130 : vector<1x64xf32> to vector<32x64xf32>
    %132 = arith.addf %129, %131 : vector<32x64xf32>
    %cst_53 = arith.constant 0.000000e+00 : f32
    %133 = vector.broadcast %cst_53 : f32 to vector<32x64xf32>
    %134 = arith.maximumf %132, %133 : vector<32x64xf32>
    %135 = arith.truncf %134 : vector<32x64xf32> to vector<32x64xbf16>
    %c0_54 = arith.constant 0 : index
    %c0_55 = arith.constant 0 : index
    %136 = vector.load %arg12[%c0_54, %c0_55] : memref<64x32xbf16, #tpu.memory_space<vmem>>, vector<64x32xbf16>
    %cst_56 = arith.constant dense<0.000000e+00> : vector<32x32xf32>
    %137 = tpu.matmul %135, %136, %cst_56 {dimension_numbers = #tpu.dot_dimension_numbers<[1], [0], [0], [1], [0, 0, 1, 1], [], []>} : vector<32x64xbf16>, vector<64x32xbf16>, vector<32x32xf32> -> vector<32x32xf32>
    %c0_57 = arith.constant 0 : index
    %c0_58 = arith.constant 0 : index
    %138 = vector.load %arg13[%c0_57, %c0_58] : memref<1x32xf32, #tpu.memory_space<vmem>>, vector<1x32xf32>
    %139 = vector.broadcast %138 : vector<1x32xf32> to vector<32x32xf32>
    %140 = arith.addf %137, %139 : vector<32x32xf32>
    %141 = arith.addf %140, %126 : vector<32x32xf32>
    %cst_59 = arith.constant dense<0.000000e+00> : vector<32xf32>
    %142 = vector.multi_reduction <add>, %141, %cst_59 [1] : vector<32x32xf32> to vector<32xf32>
    %143 = vector.shape_cast %142 : vector<32xf32> to vector<32x1xf32>
    %cst_60 = arith.constant 3.200000e+01 : f32
    %144 = vector.broadcast %cst_60 : f32 to vector<32x1xf32>
    %145 = arith.divf %143, %144 : vector<32x1xf32>
    %146 = vector.broadcast %145 : vector<32x1xf32> to vector<32x32xf32>
    %147 = arith.subf %141, %146 : vector<32x32xf32>
    %148 = arith.mulf %147, %147 : vector<32x32xf32>
    %cst_61 = arith.constant dense<0.000000e+00> : vector<32xf32>
    %149 = vector.multi_reduction <add>, %148, %cst_61 [1] : vector<32x32xf32> to vector<32xf32>
    %150 = vector.shape_cast %149 : vector<32xf32> to vector<32x1xf32>
    %cst_62 = arith.constant 3.200000e+01 : f32
    %151 = vector.broadcast %cst_62 : f32 to vector<32x1xf32>
    %152 = arith.divf %150, %151 : vector<32x1xf32>
    %cst_63 = arith.constant 9.99999974E-6 : f32
    %153 = vector.broadcast %cst_63 : f32 to vector<32x1xf32>
    %154 = arith.addf %152, %153 : vector<32x1xf32>
    %155 = math.rsqrt %154 : vector<32x1xf32>
    %156 = vector.broadcast %155 : vector<32x1xf32> to vector<32x32xf32>
    %157 = arith.mulf %147, %156 : vector<32x32xf32>
    %c0_64 = arith.constant 0 : index
    %c0_65 = arith.constant 0 : index
    %158 = vector.load %arg14[%c0_64, %c0_65] : memref<1x32xf32, #tpu.memory_space<vmem>>, vector<1x32xf32>
    %159 = vector.broadcast %158 : vector<1x32xf32> to vector<32x32xf32>
    %160 = arith.mulf %157, %159 : vector<32x32xf32>
    %c0_66 = arith.constant 0 : index
    %c0_67 = arith.constant 0 : index
    %161 = vector.load %arg15[%c0_66, %c0_67] : memref<1x32xf32, #tpu.memory_space<vmem>>, vector<1x32xf32>
    %162 = vector.broadcast %161 : vector<1x32xf32> to vector<32x32xf32>
    %163 = arith.addf %160, %162 : vector<32x32xf32>
    %c0_68 = arith.constant 0 : index
    %c0_69 = arith.constant 0 : index
    %164 = vector.load %arg16[%c0_68, %c0_69] : memref<32x32xf32, #tpu.memory_space<vmem>>, vector<32x32xf32>
    tpu.vector_store %arg16[%c0_68, %c0_69], %163 {strides = array<i32>} : memref<32x32xf32, #tpu.memory_space<vmem>>, vector<32x32xf32>,
    return
  }
  func.func @transform_0(%arg0: i32) -> (i32, i32) {
    %c0_i32 = arith.constant 0 : i32
    %c0_i32_0 = arith.constant 0 : i32
    return %arg0, %c0_i32 : i32, i32
  }
  func.func @transform_1(%arg0: i32) -> (i32, i32) {
    %c0_i32 = arith.constant 0 : i32
    %c0_i32_0 = arith.constant 0 : i32
    %c0_i32_1 = arith.constant 0 : i32
    return %c0_i32, %c0_i32_0 : i32, i32
  }
  func.func @transform_2(%arg0: i32) -> (i32, i32) {
    %c0_i32 = arith.constant 0 : i32
    %c0_i32_0 = arith.constant 0 : i32
    return %arg0, %c0_i32 : i32, i32
  }
  func.func @transform_3(%arg0: i32) -> (i32, i32) {
    %c0_i32 = arith.constant 0 : i32
    %c0_i32_0 = arith.constant 0 : i32
    %c0_i32_1 = arith.constant 0 : i32
    return %c0_i32, %c0_i32_0 : i32, i32
  }
  func.func @transform_4(%arg0: i32) -> (i32, i32) {
    %c0_i32 = arith.constant 0 : i32
    %c0_i32_0 = arith.constant 0 : i32
    %c0_i32_1 = arith.constant 0 : i32
    return %c0_i32, %c0_i32_0 : i32, i32
  }
  func.func @transform_5(%arg0: i32) -> (i32, i32) {
    %c0_i32 = arith.constant 0 : i32
    %c0_i32_0 = arith.constant 0 : i32
    %c0_i32_1 = arith.constant 0 : i32
    return %c0_i32, %c0_i32_0 : i32, i32
  }
  func.func @transform_6(%arg0: i32) -> (i32, i32) {
    %c0_i32 = arith.constant 0 : i32
    %c0_i32_0 = arith.constant 0 : i32
    %c0_i32_1 = arith.constant 0 : i32
    return %c0_i32, %c0_i32_0 : i32, i32
  }
  func.func @transform_7(%arg0: i32) -> (i32, i32) {
    %c0_i32 = arith.constant 0 : i32
    %c0_i32_0 = arith.constant 0 : i32
    %c0_i32_1 = arith.constant 0 : i32
    return %c0_i32, %c0_i32_0 : i32, i32
  }
  func.func @transform_8(%arg0: i32) -> (i32, i32) {
    %c0_i32 = arith.constant 0 : i32
    %c0_i32_0 = arith.constant 0 : i32
    %c0_i32_1 = arith.constant 0 : i32
    return %c0_i32, %c0_i32_0 : i32, i32
  }
  func.func @transform_9(%arg0: i32) -> (i32, i32) {
    %c0_i32 = arith.constant 0 : i32
    %c0_i32_0 = arith.constant 0 : i32
    %c0_i32_1 = arith.constant 0 : i32
    return %c0_i32, %c0_i32_0 : i32, i32
  }
  func.func @transform_10(%arg0: i32) -> (i32, i32) {
    %c0_i32 = arith.constant 0 : i32
    %c0_i32_0 = arith.constant 0 : i32
    %c0_i32_1 = arith.constant 0 : i32
    return %c0_i32, %c0_i32_0 : i32, i32
  }
  func.func @transform_11(%arg0: i32) -> (i32, i32) {
    %c0_i32 = arith.constant 0 : i32
    %c0_i32_0 = arith.constant 0 : i32
    %c0_i32_1 = arith.constant 0 : i32
    return %c0_i32, %c0_i32_0 : i32, i32
  }
  func.func @transform_12(%arg0: i32) -> (i32, i32) {
    %c0_i32 = arith.constant 0 : i32
    %c0_i32_0 = arith.constant 0 : i32
    %c0_i32_1 = arith.constant 0 : i32
    return %c0_i32, %c0_i32_0 : i32, i32
  }
  func.func @transform_13(%arg0: i32) -> (i32, i32) {
    %c0_i32 = arith.constant 0 : i32
    %c0_i32_0 = arith.constant 0 : i32
    %c0_i32_1 = arith.constant 0 : i32
    return %c0_i32, %c0_i32_0 : i32, i32
  }
  func.func @transform_14(%arg0: i32) -> (i32, i32) {
    %c0_i32 = arith.constant 0 : i32
    %c0_i32_0 = arith.constant 0 : i32
    %c0_i32_1 = arith.constant 0 : i32
    return %c0_i32, %c0_i32_0 : i32, i32
  }
  func.func @transform_15(%arg0: i32) -> (i32, i32) {
    %c0_i32 = arith.constant 0 : i32
    %c0_i32_0 = arith.constant 0 : i32
    return %arg0, %c0_i32 : i32, i32
  }
}

</mosaic_0001>

<bundles_post_ra>
// kernel: graph_transformer_forward.5
= control target key start
LH: loop header
LB: loop body
LE: loop exit
PB: predicated region body
PF: predicated region fallthrough
CT: control target
= control target key end

     0   :  { %s693_s24 = smov 0   ;;  %s738_s0 = inlined_call_operand.vmem [shape: f32[64,32], index: 0, kind: input, shape index: {}]   ;;  %s739_s1 = inlined_call_operand.vmem [shape: bf16[32,16], index: 1, kind: input, shape index: {}]   ;;  %s740_s2 = inlined_call_operand.vmem [shape: f32[1,16], index: 2, kind: input, shape index: {}]   ;;  %s741_s3 = inlined_call_operand.vmem [shape: bf16[16,8], index: 3, kind: input, shape index: {}]   ;;  %s742_s4 = inlined_call_operand.vmem [shape: f32[1,8], index: 4, kind: input, shape index: {}]   ;;  %s743_s5 = inlined_call_operand.vmem [shape: bf16[8,4], index: 5, kind: input, shape index: {}]   ;;  %s744_s6 = inlined_call_operand.vmem [shape: f32[1,4], index: 6, kind: input, shape index: {}]   ;;  %s745_s7 = inlined_call_operand.vmem [shape: f32[64,4], index: 7, kind: output, shape index: {}]  }
   0x1 LB: > { %s580_s25 = sadd.s32 4294967295, %s651_s24   ;;  %p584_p0 = scmp.ge.s32.totalorder %s651_s24, 1  ;;  %s651_s24 = sphi %s693_s24, %s17_s24  }
   0x2   : > { %p238_p1 = scmp.lt.s32.totalorder %s651_s24, 3 }
   0x4   : > { %p239_p2 = pnand %p584_p0, %p238_p1 }
   0x5   : > { %s585_s28 = sshll.u32 (!%p239_p2), %s580_s25, 2 }
   0x6   : > { %242 = sbr.rel (%p239_p2) target bundleno = 634 (0x27a), region = 48  ;;  %p271_p3 = scmp.lt.s32.totalorder (!%p239_p2), %s585_s28, 7 }
   0xb   : > { %v642_v0 = vld [vmem:[%s739_s1 + $0x8] sm:$0xff]   ;;  %v643_v1 = vld [vmem:[%s739_s1] sm:$0xff]   ;;  %s747_s28 = smov (!%p271_p3, %s585_s28), 7  ;;  %vm312_vm0 = vcmask 261120   ;;  %vm389_vm1 = vcmask 130048   ;;  %vm466_vm2 = vcmask 1043456  }
   0xc   : > { %613 = vmatprep.subr.bf16.mxu0 %v642_v0  ;;  %s586_s8 = sshll.u32 %s747_s28, 3  ;;  %v644_v8 = vld [vmem:[%s741_s3] sm:$0xff]   ;;  %vm459_vm3 = vcmask 64512   ;;  %vm519_vm4 = vcmask 31744  }
   0xd   : > { %614 = vmatpush3.bf16.msra.mxu0 %v642_v0  ;;  %s274_s11 = scalar_lea.vmem %s738_s0, %s586_s8  ;;  %621 = vmatprep.subr.bf16.mxu1 %v644_v8  ;;  %v589_v11 = vld [vmem:[%s740_s2] ss:$0 sm:$0xff]  ;;  %s280_s22 = scalar_lea.vmem %s745_s7, %s586_s8 }
   0xe   : > { %615 = vmatprep.subr.bf16.mxu0 %v643_v1  ;;  %v283_v2 = vld [vmem:[%s274_s11] sm:$0xff]  ;;  %v284_v3 = vld [vmem:[%s274_s11 + $0x8] sm:$0xff]  ;;  %v285_v4 = vld [vmem:[%s274_s11 + $0x10] sm:$0xff]  ;;  %622 = vmatpush3.bf16.msra.mxu1 %v644_v8 }
   0xf   : > { %v287_v5 = vpack.c.bf16 %v284_v3, %v283_v2  ;;  %v286_v6 = vld [vmem:[%s274_s11 + $0x18] sm:$0xff]  ;;  %v451_v24 = vld [vmem:[%s743_s5] sm:$0xf] }
  0x10   : > { %v288_v7 = vpack.c.bf16 %v286_v6, %v285_v4  ;;  %633 = vmatprep.subr.msk.bf16.mxu1 %vm466_vm2, %v451_v24  ;;  %v468_v25 = vsel %vm466_vm2, %v451_v24, 0  ;;  %v594_v28 = vld [vmem:[%s742_s4] ss:$0 sm:$0xff] }
  0x11   : > { %616 = vmatpush3.bf16.msra.mxu0 %v643_v1  ;;  %617 = vmatprep.mubr.msk.bf16.mxu0 %vm312_vm0, %v287_v5  ;;  %v598_v42 = vld [vmem:[%s744_s6] ss:$0 sm:$0xff] }
  0x14   : > { %618 = vmatmul.mubr.msk.bf16.vlgmr.msra.gmra.mxu0 %vm312_vm0, %v288_v7 }
  0xd4   : > { %v619_v9 = vpop.f32.mrf.mxu0 }
  0xd5   : > { %v362_v15 = vadd.f32 %v619_v9, %v589_v11 }
  0xd6   : > { %v353_v10 = vpop.f32.mrf.mxu0 }
  0xd7   : > { %v354_v13 = vadd.f32 %v589_v11, %v353_v10  ;;  %v370_v21 = vmax.f32 %v362_v15, 0.0 }
  0xd8   : > { %v620_v12 = vpop.f32.mrf.mxu0 }
  0xd9   : > { %v365_v14 = vadd.f32 %v620_v12, %v589_v11  ;;  %v368_v19 = vmax.f32 %v354_v13, 0.0 }
  0xda   : > { %v356_v16 = vpop.f32.mrf.mxu0 }
  0xdb   : > { %v357_v17 = vadd.f32 %v589_v11, %v356_v16  ;;  %v371_v18 = vmax.f32 %v365_v14, 0.0 }
  0xdd   : > { %v369_v20 = vmax.f32 %v357_v17, 0.0  ;;  %v373_v23 = vpack.c.bf16 %v371_v18, %v370_v21 }
  0xdf   : > { %v372_v22 = vpack.c.bf16 %v369_v20, %v368_v19 }
  0xe1   : > { %623 = vmatprep.mubr.msk.bf16.mxu1 %vm389_vm1, %v372_v22 }
  0xe2   : > { %624 = vmatmul.mubr.msk.bf16.vlgmr.msra.gmra.mxu1 %vm389_vm1, %v373_v23 }
  0xe3   : > { %628 = vmatpush3.bf16.msra.mxu1 %v468_v25 }
 0x1a2   : > { %v625_v26 = vpop.f32.mrf.mxu1 }
 0x1a3   : > { %v439_v32 = vadd.f32 %v625_v26, %v594_v28 }
 0x1a4   : > { %v430_v27 = vpop.f32.mrf.mxu1 }
 0x1a5   : > { %v431_v30 = vadd.f32 %v594_v28, %v430_v27  ;;  %v447_v38 = vmax.f32 %v439_v32, 0.0 }
 0x1a6   : > { %v626_v29 = vpop.f32.mrf.mxu1 }
 0x1a7   : > { %v442_v31 = vadd.f32 %v626_v29, %v594_v28  ;;  %v445_v36 = vmax.f32 %v431_v30, 0.0 }
 0x1a8   : > { %v433_v33 = vpop.f32.mrf.mxu1 }
 0x1a9   : > { %v434_v34 = vadd.f32 %v594_v28, %v433_v33  ;;  %v448_v35 = vmax.f32 %v442_v31, 0.0 }
 0x1ab   : > { %v446_v37 = vmax.f32 %v434_v34, 0.0  ;;  %v450_v40 = vpack.c.bf16 %v448_v35, %v447_v38 }
 0x1ad   : > { %v449_v39 = vpack.c.bf16 %v446_v37, %v445_v36 }
 0x1af   : > { %629 = vmatprep.mubr.msk.bf16.mxu1 %vm459_vm3, %v449_v39 }
 0x1b0   : > { %630 = vmatmul.mubr.msk.bf16.vlgmr.msra.gmra.mxu1 %vm459_vm3, %v450_v40 }
 0x270   : > { %v631_v41 = vpop.f32.mrf.mxu1 }
 0x271   : > { %v513_v48 = vadd.f32 %v631_v41, %v598_v42 }
 0x272   : > { %v504_v43 = vpop.f32.mrf.mxu1 }
 0x273   : > { %v505_v44 = vadd.f32 %v598_v42, %v504_v43  ;;  %522 = vst.msk [vmem:[%s280_s22 + $0x10] sm:$0xff] %vm519_vm4, %v513_v48 }
 0x274   : > { %v632_v45 = vpop.f32.mrf.mxu1 }
 0x275   : > { %520 = vst.msk [vmem:[%s280_s22] sm:$0xff] %vm519_vm4, %v505_v44  ;;  %v516_v49 = vadd.f32 %v632_v45, %v598_v42 }
 0x276   : > { %v507_v46 = vpop.f32.mrf.mxu1 }
 0x277   : > { %v508_v47 = vadd.f32 %v598_v42, %v507_v46  ;;  %523 = vst.msk [vmem:[%s280_s22 + $0x18] sm:$0xff] %vm519_vm4, %v516_v49 }
 0x279   : > { %521 = vst.msk [vmem:[%s280_s22 + $0x8] sm:$0xff] %vm519_vm4, %v508_v47 }
 0x27a PF: > { %s17_s24 = sadd.s32 1, %s651_s24  }
 0x27b   : > { %p14_p4 = scmp.ge.s32.totalorder %s17_s24, 4  }
 0x27d   :  { %16 = sbr.rel (!%p14_p4) target bundleno = 1 (0x1), region = 78 }

// kernel: graph_transformer_forward.3
= control target key start
LH: loop header
LB: loop body
LE: loop exit
PB: predicated region body
PF: predicated region fallthrough
CT: control target
= control target key end

     0   :  { %s2579_s18 = smov 0   ;;  %s2937_s0 = inlined_call_operand.vmem [shape: f32[64,32], index: 0, kind: input, shape index: {}, may-alias: {0,1}]   ;;  %s2938_s1 = inlined_call_operand.vmem [shape: f32[64,32], index: 1, kind: input, shape index: {}, may-alias: {0,1}]   ;;  %s2939_s2 = inlined_call_operand.vmem [shape: f32[64,64], index: 2, kind: input, shape index: {}]   ;;  %s2940_s3 = inlined_call_operand.vmem [shape: bf16[32,32], index: 3, kind: input, shape index: {}]   ;;  %s2941_s4 = inlined_call_operand.vmem [shape: bf16[32,64], index: 4, kind: input, shape index: {}]   ;;  %s2942_s5 = inlined_call_operand.vmem [shape: bf16[32,32], index: 5, kind: input, shape index: {}]   ;;  %s2943_s6 = inlined_call_operand.vmem [shape: f32[1,32], index: 6, kind: input, shape index: {}]   ;;  %s2944_s7 = inlined_call_operand.vmem [shape: f32[1,32], index: 7, kind: input, shape index: {}]   ;;  %s2945_s8 = inlined_call_operand.vmem [shape: f32[1,32], index: 8, kind: input, shape index: {}]   ;;  %s2946_s9 = inlined_call_operand.vmem [shape: bf16[32,64], index: 9, kind: input, shape index: {}]   ;;  %s2947_s10 = inlined_call_operand.vmem [shape: f32[1,64], index: 10, kind: input, shape index: {}]   ;;  %s2948_s11 = inlined_call_operand.vmem [shape: bf16[64,32], index: 11, kind: input, shape index: {}]   ;;  %s2949_s12 = inlined_call_operand.vmem [shape: f32[1,32], index: 12, kind: input, shape index: {}]   ;;  %s2950_s13 = inlined_call_operand.vmem [shape: f32[1,32], index: 13, kind: input, shape index: {}]   ;;  %s2951_s14 = inlined_call_operand.vmem [shape: f32[1,32], index: 14, kind: input, shape index: {}]   ;;  %s2952_s15 = inlined_call_operand.vmem [shape: f32[64,32], index: 15, kind: output, shape index: {}]  }
   0x1 LB: > { %s2029_s19 = sadd.s32 4294967295, %s2487_s18   ;;  %p2033_p0 = scmp.ge.s32.totalorder %s2487_s18, 1  ;;  %s2487_s18 = sphi %s2579_s18, %s25_s18  }
   0x2   : > { %p449_p1 = scmp.lt.s32.totalorder %s2487_s18, 3 }
   0x4   : > { %p450_p2 = pnand %p2033_p0, %p449_p1 }
   0x5   : > { %s2034_s22 = sshll.u32 (!%p450_p2), %s2029_s19, 2  ;;  %s2489_s23 = smov (!%p450_p2), 96  }
   0x6   : > { %453 = sbr.rel (%p450_p2) target bundleno = 2814 (0xafe), region = 80  ;;  %p503_p3 = scmp.lt.s32.totalorder (!%p450_p2), %s2034_s22, 7 }
   0x7   : > { %s2490_s24 = smov (!%p450_p2), 120   ;;  %s2491_s25 = smov (!%p450_p2), 88  }
   0x8   : > { %s2492_s26 = smov (!%p450_p2), 112   ;;  %s2493_s28 = smov (!%p450_p2), 80  }
   0x9   : > { %s2494_s29 = smov (!%p450_p2), 104   ;;  %s2495_s30 = smov (!%p450_p2), 72  }
   0xa   : > { %s2496_s21 = smov (!%p450_p2), 8  }
   0xb   : > { %v2385_v0 = vld [vmem:[%s2940_s3 + $0x8] sm:$0xff]   ;;  %v2386_v1 = vld [vmem:[%s2940_s3] sm:$0xff]   ;;  %s2954_s22 = smov (!%p503_p3, %s2034_s22), 7  ;;  %vm555_vm0 = vcmask 261120   ;;  %v527_v13 = vld [vmem:[%s2938_s1 + $0x10] sm:$0xff]  ;;  %vm714_vm1 = vcmask 64512  }
   0xc   : > { %2177 = vmatprep.subr.bf16.mxu1 %v2385_v0  ;;  %v2387_v2 = vld [vmem:[%s2941_s4 + $0x8] sm:$0xff]   ;;  %s2596_s27 = sshll.u32 %s2954_s22, 3  ;;  %v525_v3 = vld [vmem:[%s2938_s1] sm:$0xff]  ;;  %v528_v14 = vld [vmem:[%s2938_s1 + $0x18] sm:$0xff]  ;;  %vm802_vm2 = vcmask 523264   ;;  %s2497_s22 = smov 16  }
   0xd   : > { %2178 = vmatpush3.bf16.msra.mxu1 %v2385_v0  ;;  %v526_v4 = vld [vmem:[%s2938_s1 + $0x8] sm:$0xff]  ;;  %s2608_s20 = scalar_lea.vmem %s2937_s0, %s2596_s27  ;;  %v2388_v10 = vld [vmem:[%s2941_s4] sm:$0xff]   ;;  %v612_v17 = vpack.c.bf16 %v528_v14, %v527_v13  ;;  %v531_v19 = vld [vmem:[%s2938_s1 + $0x30] sm:$0xff]  ;;  %s512_s19 = scalar_lea.vmem %s2939_s2, %s2596_s27  ;;  %vm1530_vm3 = vcmask 130048   ;;  %vm1535_vm4 = vcmask 195584  }
   0xe   : > { %2179 = vmatprep.subr.bf16.mxu1 %v2386_v1  ;;  %v521_v5 = vld [vmem:[%s2608_s20] sm:$0xff]  ;;  %v522_v6 = vld [vmem:[%s2608_s20 + $0x8] sm:$0xff]  ;;  %v523_v8 = vld [vmem:[%s2608_s20 + $0x10] sm:$0xff]  ;;  %v611_v11 = vpack.c.bf16 %v526_v4, %v525_v3 }
   0xf   : > { %v537_v7 = vpack.c.bf16 %v522_v6, %v521_v5  ;;  %v524_v9 = vld [vmem:[%s2608_s20 + $0x18] sm:$0xff]  ;;  %v529_v15 = vld [vmem:[%s2938_s1 + $0x20] sm:$0xff]  ;;  %v530_v16 = vld [vmem:[%s2938_s1 + $0x28] sm:$0xff] }
  0x10   : > { %v538_v12 = vpack.c.bf16 %v524_v9, %v523_v8  ;;  %v613_v18 = vpack.c.bf16 %v530_v16, %v529_v15  ;;  %v532_v20 = vld [vmem:[%s2938_s1 + $0x38] sm:$0xff]  ;;  %v2678_v13 = vld [vmem:[%s512_s19 + $0x10] sm:$0xff] }
  0x11   : > { %2180 = vmatpush3.bf16.msra.mxu1 %v2386_v1  ;;  %2181 = vmatprep.mubr.msk.bf16.mxu1 %vm555_vm0, %v537_v7  ;;  %v614_v21 = vpack.c.bf16 %v532_v20, %v531_v19  ;;  %v2672_v8 = vld [vmem:[%s512_s19 + $0x18] sm:$0xff] }
  0x12   : > { %2185 = vmatprep.subr.bf16.mxu1 %v2387_v2 }
  0x14   : > { %2182 = vmatmul.mubr.msk.bf16.vlgmr.msra.gmra.mxu1 %vm555_vm0, %v538_v12 }
  0x15   : > { %2186 = vmatpush3.bf16.msra.mxu1 %v2387_v2  ;;  %2189 = vmatprep.mubr.msk.bf16.mxu1 %vm555_vm0, %v611_v11  ;;  %v2676_v11 = vld [vmem:[%s512_s19 + $0x8] sm:$0xff] }
  0x16   : > { %2187 = vmatprep.subr.bf16.mxu1 %v2388_v10 }
  0x19   : > { %2188 = vmatpush3.bf16.msra.mxu1 %v2388_v10  ;;  %v2674_v10 = vld [vmem:[%s512_s19] sm:$0xff] }
  0x1c   : > { %2190 = vmatmul.mubr.msk.bf16.vlgmr.msra.gmra.mxu1 %vm555_vm0, %v612_v17 }
  0x1d   : > { %2193 = vmatprep.mubr.msk.bf16.mxu1 %vm555_vm0, %v613_v18 }
  0x24   : > { %2194 = vmatmul.mubr.msk.bf16.gmra.mxu1 %vm555_vm0, %v614_v21 }
  0xd4   : > { %v2183_v22 = vpop.f32.mrf.mxu1 }
  0xd6   : > { %v596_v23 = vpop.f32.mrf.mxu1 }
  0xd8   : > { %v2184_v24 = vpop.f32.mrf.mxu1 }
  0xd9   : > { %v709_v40 = vpack.c.bf16 %v2184_v24, %v2183_v22 }
  0xda   : > { %v599_v25 = vpop.f32.mrf.mxu1 }
  0xdb   : > { %v2641_v26 = vpack.c.bf16 %v599_v25, %v596_v23 }
  0xdc   : > { %v2191_v27 = vpop.f32.mrf.mxu1 }
  0xdd   : > { %2205 = vmatprep.mubr.msk.bf16.mxu0 %vm714_vm1, %v2641_v26 }
  0xde   : > { %v677_v28 = vpop.f32.mrf.mxu1 }
  0xe0   : > { %v2192_v29 = vpop.f32.mrf.mxu1 }
  0xe1   : > { %v711_v30 = vpack.c.bf16 %v2192_v29, %v2191_v27 }
  0xe2   : > { %v680_v31 = vpop.f32.mrf.mxu1 }
  0xe3   : > { %823 = vrot.lane.b32.xlu1 %v711_v30, %s2489_s23  ;;  %v710_v33 = vpack.c.bf16 %v680_v31, %v677_v28  ;;  %v725_v42 = vsel %vm714_vm1, %v711_v30, 0 }
  0xe4   : > { %v2195_v32 = vpop.f32.mrf.mxu1 }
  0xe5   : > { %v722_v43 = vsel %vm714_vm1, %v710_v33, 0 }
  0xe6   : > { %v693_v34 = vpop.f32.mrf.mxu1 }
  0xe7   : > { %821 = vrot.lane.b32.xlu1 %v710_v33, %s2489_s23 }
  0xe8   : > { %v2196_v35 = vpop.f32.mrf.mxu1 }
  0xe9   : > { %v713_v36 = vpack.c.bf16 %v2196_v35, %v2195_v32 }
  0xea   : > { %v696_v37 = vpop.f32.mrf.mxu1 }
  0xeb   : > { %v712_v38 = vpack.c.bf16 %v696_v37, %v693_v34  ;;  %827 = vrot.lane.b32.xlu0 %v713_v36, %s2489_s23  ;;  %2321 = vmatprep.subr.msk.bf16.mxu0 %vm714_vm1, %v713_v36  ;;  %v731_v39 = vsel %vm714_vm1, %v713_v36, 0 }
  0xec   : > { %2198 = vmatpush3.bf16.xpose.msra.mxu0 %v731_v39 }
  0xed   : > { %910 = vrot.lane.b32.xlu1 %v712_v38, %s2490_s24  ;;  %2322 = vmatprep.subr.msk.bf16.mxu0 %vm714_vm1, %v712_v38  ;;  %v728_v41 = vsel %vm714_vm1, %v712_v38, 0 }
  0xef   : > { %825 = vrot.lane.b32.xlu0 %v712_v38, %s2489_s23 }
  0xf1   : > { %906 = vrot.lane.b32.xlu1 %v710_v33, %s2490_s24 }
  0xf3   : > { %912 = vrot.lane.b32.xlu0 %v713_v36, %s2490_s24 }
  0xf4   : > { %2200 = vmatpush3.bf16.xpose.msra.mxu0 %v728_v41 }
  0xf5   : > { %904 = vrot.lane.b32.xlu1 %v709_v40, %s2490_s24  ;;  %2323 = vmatprep.subr.msk.bf16.mxu0 %vm714_vm1, %v711_v30 }
  0xf7   : > { %908 = vrot.lane.b32.xlu0 %v711_v30, %s2490_s24 }
  0xf9   : > { %1019 = vrot.lane.b32.xlu1 %v712_v38, %s2491_s25 }
  0xfb   : > { %902 = vrot.lane.b32.xlu0 %v2641_v26, %s2490_s24 }
  0xfc   : > { %2202 = vmatpush3.bf16.xpose.msra.mxu0 %v725_v42 }
  0xfd   : > { %1015 = vrot.lane.b32.xlu1 %v710_v33, %s2491_s25  ;;  %2324 = vmatprep.subr.msk.bf16.mxu0 %vm714_vm1, %v710_v33 }
  0xff   : > { %1021 = vrot.lane.b32.xlu0 %v713_v36, %s2491_s25 }
 0x101   : > { %1102 = vrot.lane.b32.xlu1 %v712_v38, %s2492_s26 }
 0x103   : > { %1017 = vrot.lane.b32.xlu0 %v711_v30, %s2491_s25 }
 0x104   : > { %2204 = vmatpush3.bf16.xpose.msra.mxu0 %v722_v43 }
 0x105   : > { %1098 = vrot.lane.b32.xlu1 %v710_v33, %s2492_s26 }
 0x107   : > { %1104 = vrot.lane.b32.xlu0 %v713_v36, %s2492_s26 }
 0x109   : > { %1096 = vrot.lane.b32.xlu1 %v709_v40, %s2492_s26 }
 0x10b   : > { %1100 = vrot.lane.b32.xlu0 %v711_v30, %s2492_s26  ;;  %2206 = vmatmul.mubr.msk.bf16.vlgmr.msra.gmra.mxu0 %vm714_vm1, %v709_v40 }
 0x10d   : > { %1211 = vrot.lane.b32.xlu1 %v712_v38, %s2493_s28 }
 0x10f   : > { %1094 = vrot.lane.b32.xlu0 %v2641_v26, %s2492_s26 }
 0x111   : > { %1207 = vrot.lane.b32.xlu1 %v710_v33, %s2493_s28 }
 0x113   : > { %1213 = vrot.lane.b32.xlu0 %v713_v36, %s2493_s28 }
 0x115   : > { %1294 = vrot.lane.b32.xlu1 %v712_v38, %s2494_s29 }
 0x117   : > { %1209 = vrot.lane.b32.xlu0 %v711_v30, %s2493_s28  ;;  %s2498_s28 = smov 24  }
 0x119   : > { %1290 = vrot.lane.b32.xlu1 %v710_v33, %s2494_s29 }
 0x11b   : > { %1296 = vrot.lane.b32.xlu0 %v713_v36, %s2494_s29 }
 0x11d   : > { %1288 = vrot.lane.b32.xlu1 %v709_v40, %s2494_s29 }
 0x11f   : > { %1292 = vrot.lane.b32.xlu0 %v711_v30, %s2494_s29 }
 0x121   : > { %1403 = vrot.lane.b32.xlu1 %v712_v38, %s2495_s30 }
 0x123   : > { %1286 = vrot.lane.b32.xlu0 %v2641_v26, %s2494_s29 }
 0x125   : > { %1399 = vrot.lane.b32.xlu1 %v710_v33, %s2495_s30 }
 0x127   : > { %1405 = vrot.lane.b32.xlu0 %v713_v36, %s2495_s30 }
 0x12b   : > { %1401 = vrot.lane.b32.xlu0 %v711_v30, %s2495_s30 }
 0x155   : > { %v824_v44 = vpop.permute.xlu1 %823 }
 0x159   : > { %v822_v45 = vpop.permute.xlu1 %821 }
 0x15d   : > { %v828_v46 = vpop.permute.xlu0 %827 }
 0x15e   : > { %2209 = vmatprep.subr.bf16.mxu1 %v828_v46 }
 0x15f   : > { %2210 = vmatpush3.bf16.msra.mxu1 %v828_v46  ;;  %v2657_v47 = vpop.permute.xlu1 %910 }
 0x160   : > { %v927_v22 = vsel %vm714_vm1, %v2657_v47, 0 }
 0x161   : > { %v826_v48 = vpop.permute.xlu0 %825 }
 0x162   : > { %2211 = vmatprep.subr.bf16.mxu1 %v826_v48 }
 0x163   : > { %2212 = vmatpush3.bf16.msra.mxu1 %v826_v48  ;;  %v2659_v50 = vpop.permute.xlu1 %906 }
 0x164   : > { %2213 = vmatprep.subr.bf16.mxu1 %v824_v44  ;;  %v921_v28 = vsel %vm714_vm1, %v2659_v50, 0 }
 0x165   : > { %v913_v49 = vpop.permute.xlu0 %912 }
 0x166   : > { %v930_v21 = vsel %vm714_vm1, %v913_v49, 0 }
 0x167   : > { %2214 = vmatpush3.bf16.msra.mxu1 %v824_v44  ;;  %v2662_v52 = vpop.permute.xlu1 %904 }
 0x168   : > { %2215 = vmatprep.subr.bf16.mxu1 %v822_v45 }
 0x169   : > { %v909_v51 = vpop.permute.xlu0 %908 }
 0x16a   : > { %v924_v25 = vsel %vm714_vm1, %v909_v51, 0 }
 0x16b   : > { %2216 = vmatpush3.bf16.msra.mxu1 %v822_v45  ;;  %v1020_v55 = vpop.permute.xlu1 %1019 }
 0x16c   : > { %2325 = vmatprep.subr.msk.bf16.mxu1 %vm714_vm1, %v913_v49 }
 0x16d   : > { %v903_v53 = vpop.permute.xlu0 %902 }
 0x16f   : > { %v1016_v57 = vpop.permute.xlu1 %1015 }
 0x171   : > { %v1022_v54 = vpop.permute.xlu0 %1021 }
 0x172   : > { %2233 = vmatprep.subr.bf16.mxu0 %v1022_v54 }
 0x173   : > { %2234 = vmatpush3.bf16.msra.mxu0 %v1022_v54  ;;  %v2707_v24 = vpop.permute.xlu1 %1102 }
 0x174   : > { %2235 = vmatprep.subr.bf16.mxu0 %v1020_v55 }
 0x175   : > { %v1018_v56 = vpop.permute.xlu0 %1017 }
 0x177   : > { %2236 = vmatpush3.bf16.msra.mxu0 %v1020_v55  ;;  %v2712_v27 = vpop.permute.xlu1 %1098 }
 0x178   : > { %2237 = vmatprep.subr.bf16.mxu0 %v1018_v56 }
 0x179   : > { %v2664_v58 = vpop.permute.xlu0 %1104 }
 0x17b   : > { %2238 = vmatpush3.bf16.msra.mxu0 %v1018_v56  ;;  %v2716_v30 = vpop.permute.xlu1 %1096 }
 0x17c   : > { %2239 = vmatprep.subr.bf16.mxu0 %v1016_v57 }
 0x17d   : > { %v2705_v23 = vpop.permute.xlu0 %1100 }
 0x17f   : > { %2240 = vmatpush3.bf16.msra.mxu0 %v1016_v57  ;;  %v1212_v31 = vpop.permute.xlu1 %1211 }
 0x180   : > { %2329 = vmatprep.subr.msk.bf16.mxu0 %vm714_vm1, %v2664_v58 }
 0x181   : > { %v1095_v26 = vpop.permute.xlu0 %1094 }
 0x183   : > { %v1208_v33 = vpop.permute.xlu1 %1207 }
 0x185   : > { %v1214_v29 = vpop.permute.xlu0 %1213 }
 0x189   : > { %v1210_v32 = vpop.permute.xlu0 %1209 }
 0x18d   : > { %v2720_v34 = vpop.permute.xlu0 %1296 }
 0x1cb   : > { %v2207_v59 = vpop.f32.mrf.mxu0 }
 0x1cc   : > { %v2054_v60 = vclamps-f32 %v2207_v59, 5.0 }
 0x1cd   : > { %v767_v61 = vpop.f32.mrf.mxu0 }
 0x1ce   : > { %v2052_v62 = vclamps-f32 %v767_v61, 5.0  ;;  %v794_v2 = vmul.f32 1.442695, %v2054_v60 }
 0x1cf   : > { %v2208_v63 = vpop.f32.mrf.mxu0 }
 0x1d0   : > { %v790_v0 = vmul.f32 1.442695, %v2052_v62  ;;  %v2055_v1 = vclamps-f32 %v2208_v63, 5.0 }
 0x1d1   : > { %v770_v3 = vpop.f32.mrf.mxu0 }
 0x1d2   : > { %v796_v4 = vmul.f32 1.442695, %v2055_v1  ;;  %v2053_v5 = vclamps-f32 %v770_v3, 5.0  ;;  %2397 = vpow2.f32 %v790_v0  ;;  %v1119_v3 = vsel %vm714_vm1, %v2707_v24, 0 }
 0x1d4   : > { %2399 = vpow2.f32 %v796_v4  ;;  %v792_v6 = vmul.f32 1.442695, %v2053_v5  ;;  %v2751_v4 = vpop.permute.xlu0 %1292  ;;  %v2753_v5 = vpop.permute.xlu1 %1294 }
 0x1d5   : > { %2401 = vpow2.f32 %v794_v2  ;;  %v1122_v2 = vsel %vm714_vm1, %v2664_v58, 0  ;;  %v1116_v58 = vsel %vm714_vm1, %v2705_v23, 0 }
 0x1d6   : > { %2403 = vpow2.f32 %v792_v6 }
 0x1d8   : > { %v2759_v6 = vpop.permute.xlu0 %1286 }
 0x1df   : > { %v2398_v7 = vpop.eup %2397 }
 0x1e0   : > { %v2684_v16 = vmul.f32 %v2398_v7, %v2674_v10  ;;  %v2761_v7 = vpop.permute.xlu1 %1290 }
 0x1e1   : > { %v2400_v9 = vpop.eup %2399 }
 0x1e2   : > { %v2402_v12 = vpop.eup %2401  ;;  %v2681_v15 = vmul.f32 %v2400_v9, %v2672_v8  ;;  %v1113_v9 = vsel %vm714_vm1, %v2712_v27, 0 }
 0x1e3   : > { %v2404_v14 = vpop.eup %2403  ;;  %v2690_v18 = vmul.f32 %v2402_v12, %v2678_v13  ;;  %v1406_v12 = vpop.permute.xlu0 %1405 }
 0x1e4   : > { %v2687_v17 = vmul.f32 %v2404_v14, %v2676_v11  ;;  %v2765_v14 = vpop.permute.xlu1 %1288 }
 0x1e5   : > { %v816_v20 = vpack.c.bf16 %v2681_v15, %v2690_v18 }
 0x1e6   : > { %v815_v19 = vpack.c.bf16 %v2687_v17, %v2684_v16 }
 0x1e8   : > { %2217 = vmatprep.mubr.msk.bf16.mxu1 %vm802_vm2, %v815_v19  ;;  %v1404_v19 = vpop.permute.xlu1 %1403 }
 0x1e9   : > { %2218 = vmatmul.mubr.msk.bf16.vlgmr.msra.gmra.mxu1 %vm802_vm2, %v816_v20  ;;  %v1402_v20 = vpop.permute.xlu0 %1401 }
 0x1ea   : > { %2222 = vmatpush3.bf16.xpose.msra.mxu1 %v930_v21  ;;  %2229 = vmatprep.mubr.msk.bf16.mxu1 %vm714_vm1, %v903_v53 }
 0x1eb   : > { %2326 = vmatprep.subr.msk.bf16.mxu1 %vm714_vm1, %v2657_v47 }
 0x1ec   : > { %v1400_v21 = vpop.permute.xlu1 %1399 }
 0x1f2   : > { %2224 = vmatpush3.bf16.xpose.msra.mxu1 %v927_v22 }
 0x1f3   : > { %2327 = vmatprep.subr.msk.bf16.mxu1 %vm714_vm1, %v909_v51 }
 0x1fa   : > { %2226 = vmatpush3.bf16.xpose.msra.mxu1 %v924_v25 }
 0x1fb   : > { %2328 = vmatprep.subr.msk.bf16.mxu1 %vm714_vm1, %v2659_v50 }
 0x202   : > { %2228 = vmatpush3.bf16.xpose.msra.mxu1 %v921_v28 }
 0x203   : > { %2257 = vmatprep.subr.bf16.mxu1 %v1214_v29 }
 0x209   : > { %2230 = vmatmul.mubr.msk.bf16.vlgmr.msra.gmra.mxu1 %vm714_vm1, %v2662_v52 }
 0x20a   : > { %2258 = vmatpush3.bf16.msra.mxu1 %v1214_v29 }
 0x20b   : > { %2259 = vmatprep.subr.bf16.mxu1 %v1212_v31 }
 0x20e   : > { %2260 = vmatpush3.bf16.msra.mxu1 %v1212_v31 }
 0x20f   : > { %2261 = vmatprep.subr.bf16.mxu1 %v1210_v32 }
 0x212   : > { %2262 = vmatpush3.bf16.msra.mxu1 %v1210_v32 }
 0x213   : > { %2263 = vmatprep.subr.bf16.mxu1 %v1208_v33 }
 0x216   : > { %2264 = vmatpush3.bf16.msra.mxu1 %v1208_v33 }
 0x217   : > { %2333 = vmatprep.subr.msk.bf16.mxu1 %vm714_vm1, %v2720_v34 }
 0x2a9   : > { %v2724_v35 = vpop.f32.mrf.mxu1 }
 0x2ab   : > { %v2726_v36 = vpop.f32.mrf.mxu1 }
 0x2ad   : > { %v2728_v37 = vpop.f32.mrf.mxu1 }
 0x2af   : > { %v2730_v38 = vpop.f32.mrf.mxu1 }
 0x2c9   : > { %v2231_v39 = vpop.f32.mrf.mxu1 }
 0x2ca   : > { %v2062_v40 = vclamps-f32 %v2231_v39, 5.0 }
 0x2cb   : > { %v966_v41 = vpop.f32.mrf.mxu1 }
 0x2cc   : > { %v993_v42 = vmul.f32 1.442695, %v2062_v40  ;;  %v2060_v43 = vclamps-f32 %v966_v41, 5.0 }
 0x2cd   : > { %v2232_v44 = vpop.f32.mrf.mxu1 }
 0x2ce   : > { %2405 = vpow2.f32 %v993_v42  ;;  %v989_v45 = vmul.f32 1.442695, %v2060_v43  ;;  %v2063_v46 = vclamps-f32 %v2232_v44, 5.0 }
 0x2cf   : > { %v969_v47 = vpop.f32.mrf.mxu1 }
 0x2d0   : > { %2407 = vpow2.f32 %v989_v45  ;;  %v995_v48 = vmul.f32 1.442695, %v2063_v46  ;;  %v2061_v49 = vclamps-f32 %v969_v47, 5.0 }
 0x2d2   : > { %2409 = vpow2.f32 %v995_v48  ;;  %v991_v50 = vmul.f32 1.442695, %v2061_v49 }
 0x2d4   : > { %2411 = vpow2.f32 %v991_v50 }
 0x2db   : > { %v2406_v51 = vpop.eup %2405 }
 0x2dc   : > { %v999_v52 = vmul.f32 %v2406_v51, %v2678_v13 }
 0x2dd   : > { %v2408_v53 = vpop.eup %2407 }
 0x2de   : > { %v1007_v54 = vsel %vm802_vm2, %v999_v52, 0.0  ;;  %v997_v55 = vmul.f32 %v2408_v53, %v2674_v10 }
 0x2df   : > { %v2410_v56 = vpop.eup %2409  ;;  %1008 = vadd.xlane.f32.xlu0 %v1007_v54 }
 0x2e0   : > { %v1000_v59 = vmul.f32 %v2410_v56, %v2672_v8  ;;  %v1001_v60 = vsel %vm802_vm2, %v997_v55, 0.0 }
 0x2e1   : > { %v2412_v57 = vpop.eup %2411 }
 0x2e2   : > { %v998_v61 = vmul.f32 %v2412_v57, %v2676_v11  ;;  %v1014_v0 = vpack.c.bf16 %v1000_v59, %v999_v52  ;;  %v1010_v1 = vsel %vm802_vm2, %v1000_v59, 0.0 }
 0x2e3   : > { %1002 = vadd.xlane.f32.xlu0 %v1001_v60 }
 0x2e4   : > { %v1004_v62 = vsel %vm802_vm2, %v998_v61, 0.0  ;;  %v1013_v63 = vpack.c.bf16 %v998_v61, %v997_v55 }
 0x2e5   : > { %1005 = vadd.xlane.f32.xlu1 %v1004_v62 }
 0x2e6   : > { %2241 = vmatprep.mubr.msk.bf16.mxu0 %vm802_vm2, %v1013_v63 }
 0x2e7   : > { %1011 = vadd.xlane.f32.xlu0 %v1010_v1  ;;  %2242 = vmatmul.mubr.msk.bf16.vlgmr.msra.gmra.mxu0 %vm802_vm2, %v1014_v0 }
 0x2e8   : > { %2246 = vmatpush3.bf16.xpose.msra.mxu0 %v1122_v2  ;;  %2253 = vmatprep.mubr.msk.bf16.mxu0 %vm714_vm1, %v1095_v26 }
 0x2e9   : > { %2330 = vmatprep.subr.msk.bf16.mxu0 %vm714_vm1, %v2707_v24 }
 0x2f0   : > { %2248 = vmatpush3.bf16.xpose.msra.mxu0 %v1119_v3 }
 0x2f1   : > { %2331 = vmatprep.subr.msk.bf16.mxu0 %vm714_vm1, %v2705_v23 }
 0x2f8   : > { %2250 = vmatpush3.bf16.xpose.msra.mxu0 %v1116_v58 }
 0x2f9   : > { %2332 = vmatprep.subr.msk.bf16.mxu0 %vm714_vm1, %v2712_v27 }
 0x300   : > { %2252 = vmatpush3.bf16.xpose.msra.mxu0 %v1113_v9 }
 0x301   : > { %2281 = vmatprep.subr.bf16.mxu0 %v1406_v12 }
 0x307   : > { %2254 = vmatmul.mubr.msk.bf16.vlgmr.msra.gmra.mxu0 %vm714_vm1, %v2716_v30 }
 0x308   : > { %2282 = vmatpush3.bf16.msra.mxu0 %v1406_v12 }
 0x309   : > { %2283 = vmatprep.subr.bf16.mxu0 %v1404_v19 }
 0x30c   : > { %2284 = vmatpush3.bf16.msra.mxu0 %v1404_v19 }
 0x30d   : > { %2285 = vmatprep.subr.bf16.mxu0 %v1402_v20 }
 0x310   : > { %2286 = vmatpush3.bf16.msra.mxu0 %v1402_v20 }
 0x311   : > { %2287 = vmatprep.subr.bf16.mxu0 %v1400_v21 }
 0x314   : > { %2288 = vmatpush3.bf16.msra.mxu0 %v1400_v21 }
 0x368   : > { %v1009_v22 = vpop.xlane.xlu0 %1008 }
 0x369   : > { %v1084_v25 = vadd.f32 1e-06, %v1009_v22 }
 0x36b   : > { %2413 = vrcp.f32 %v1084_v25  ;;  %v1311_v25 = vsel %vm714_vm1, %v2753_v5, 0 }
 0x36c   : > { %v1003_v23 = vpop.xlane.xlu0 %1002 }
 0x36d   : > { %v1082_v28 = vadd.f32 1e-06, %v1003_v23 }
 0x36e   : > { %v1006_v26 = vpop.xlane.xlu1 %1005 }
 0x36f   : > { %v1083_v29 = vadd.f32 1e-06, %v1006_v26 }
 0x370   : > { %v1012_v24 = vpop.xlane.xlu0 %1011 }
 0x371   : > { %v1085_v27 = vadd.f32 1e-06, %v1012_v24  ;;  %v1314_v24 = vsel %vm714_vm1, %v2720_v34, 0  ;;  %v1308_v34 = vsel %vm714_vm1, %v2751_v4, 0 }
 0x373   : > { %2415 = vrcp.f32 %v1085_v27 }
 0x374   : > { %2417 = vrcp.f32 %v1082_v28 }
 0x375   : > { %2419 = vrcp.f32 %v1083_v29 }
 0x378   : > { %v2414_v32 = vpop.eup %2413 }
 0x380   : > { %v2416_v33 = vpop.eup %2415 }
 0x381   : > { %v2418_v40 = vpop.eup %2417 }
 0x382   : > { %v2420_v43 = vpop.eup %2419 }
 0x3a7   : > { %v2243_v30 = vpop.f32.mrf.mxu0 }
 0x3a8   : > { %v2769_v41 = vmul.f32 %v2414_v32, %v2243_v30 }
 0x3a9   : > { %v1067_v31 = vpop.f32.mrf.mxu0 }
 0x3aa   : > { %v2773_v45 = vmul.f32 %v2418_v40, %v1067_v31 }
 0x3ab   : > { %v2244_v39 = vpop.f32.mrf.mxu0 }
 0x3ac   : > { %v2771_v42 = vmul.f32 %v2416_v33, %v2244_v39 }
 0x3ad   : > { %v1070_v44 = vpop.f32.mrf.mxu0 }
 0x3ae   : > { %v2360_v46 = vpack.i.bf16 %v2771_v42, %v2769_v41  ;;  %v2777_v47 = vmul.f32 %v2420_v43, %v1070_v44  ;;  %v2390_v41 = vld [vmem:[%s2942_s5] sm:$0xff]  }
 0x3b0   : > { %v2355_v48 = vpack.i.bf16 %v2777_v47, %v2773_v45 }
 0x3c7   : > { %v2255_v49 = vpop.f32.mrf.mxu0 }
 0x3c8   : > { %v2070_v50 = vclamps-f32 %v2255_v49, 5.0 }
 0x3c9   : > { %v1158_v51 = vpop.f32.mrf.mxu0 }
 0x3ca   : > { %v1185_v52 = vmul.f32 1.442695, %v2070_v50  ;;  %v2068_v53 = vclamps-f32 %v1158_v51, 5.0 }
 0x3cb   : > { %v2256_v54 = vpop.f32.mrf.mxu0 }
 0x3cc   : > { %2421 = vpow2.f32 %v1185_v52  ;;  %v1181_v55 = vmul.f32 1.442695, %v2068_v53  ;;  %v2071_v56 = vclamps-f32 %v2256_v54, 5.0 }
 0x3cd   : > { %v1161_v57 = vpop.f32.mrf.mxu0 }
 0x3ce   : > { %2423 = vpow2.f32 %v1181_v55  ;;  %v1187_v59 = vmul.f32 1.442695, %v2071_v56  ;;  %v2069_v60 = vclamps-f32 %v1161_v57, 5.0 }
 0x3d0   : > { %2425 = vpow2.f32 %v1187_v59  ;;  %v1183_v61 = vmul.f32 1.442695, %v2069_v60 }
 0x3d2   : > { %2427 = vpow2.f32 %v1183_v61 }
 0x3d9   : > { %v2422_v62 = vpop.eup %2421 }
 0x3da   : > { %v1191_v63 = vmul.f32 %v2422_v62, %v2678_v13 }
 0x3db   : > { %v2424_v0 = vpop.eup %2423 }
 0x3dc   : > { %v1199_v1 = vsel %vm802_vm2, %v1191_v63, 0.0  ;;  %v1189_v2 = vmul.f32 %v2424_v0, %v2674_v10 }
 0x3dd   : > { %v2426_v3 = vpop.eup %2425  ;;  %1200 = vadd.xlane.f32.xlu1 %v1199_v1 }
 0x3de   : > { %v1192_v58 = vmul.f32 %v2426_v3, %v2672_v8  ;;  %v1193_v20 = vsel %vm802_vm2, %v1189_v2, 0.0  ;;  %v809_v3 = vsel %vm802_vm2, %v2690_v18, 0.0 }
 0x3df   : > { %v2428_v9 = vpop.eup %2427 }
 0x3e0   : > { %v1202_v12 = vsel %vm802_vm2, %v1192_v58, 0.0  ;;  %v1190_v19 = vmul.f32 %v2428_v9, %v2676_v11  ;;  %v1206_v22 = vpack.c.bf16 %v1192_v58, %v1191_v63  ;;  %v806_v58 = vsel %vm802_vm2, %v2687_v17, 0.0 }
 0x3e1   : > { %1203 = vadd.xlane.f32.xlu0 %v1202_v12  ;;  %1194 = vadd.xlane.f32.xlu1 %v1193_v20 }
 0x3e2   : > { %v1205_v21 = vpack.c.bf16 %v1190_v19, %v1189_v2  ;;  %v1196_v23 = vsel %vm802_vm2, %v1190_v19, 0.0 }
 0x3e4   : > { %2265 = vmatprep.mubr.msk.bf16.mxu1 %vm802_vm2, %v1205_v21 }
 0x3e5   : > { %2266 = vmatmul.mubr.msk.bf16.vlgmr.msra.gmra.mxu1 %vm802_vm2, %v1206_v22  ;;  %1197 = vadd.xlane.f32.xlu0 %v1196_v23 }
 0x3e6   : > { %2270 = vmatpush3.bf16.xpose.msra.mxu1 %v1314_v24  ;;  %2277 = vmatprep.mubr.msk.bf16.mxu1 %vm714_vm1, %v2759_v6  ;;  %v1305_v6 = vsel %vm714_vm1, %v2761_v7, 0 }
 0x3e7   : > { %2334 = vmatprep.subr.msk.bf16.mxu1 %vm714_vm1, %v2753_v5 }
 0x3ee   : > { %2272 = vmatpush3.bf16.xpose.msra.mxu1 %v1311_v25 }
 0x3ef   : > { %2335 = vmatprep.subr.msk.bf16.mxu1 %vm714_vm1, %v2751_v4 }
 0x3f6   : > { %2274 = vmatpush3.bf16.xpose.msra.mxu1 %v1308_v34 }
 0x3f7   : > { %2336 = vmatprep.subr.msk.bf16.mxu1 %vm714_vm1, %v2761_v7 }
 0x3fe   : > { %2276 = vmatpush3.bf16.xpose.msra.mxu1 %v1305_v6 }
 0x405   : > { %2278 = vmatmul.mubr.msk.bf16.vlgmr.msra.gmra.mxu1 %vm714_vm1, %v2765_v14 }
 0x466   : > { %v1201_v60 = vpop.xlane.xlu1 %1200 }
 0x467   : > { %v1276_v12 = vadd.f32 1e-06, %v1201_v60 }
 0x46a   : > { %v1204_v56 = vpop.xlane.xlu0 %1203 }
 0x46b   : > { %v1277_v9 = vadd.f32 1e-06, %v1204_v56 }
 0x46e   : > { %v1198_v0 = vpop.xlane.xlu0 %1197 }
 0x46f   : > { %v1275_v1 = vadd.f32 1e-06, %v1198_v0 }
 0x4a5   : > { %v2809_v26 = vpop.f32.mrf.mxu1 }
 0x4a7   : > { %v1259_v5 = vpop.f32.mrf.mxu1 }
 0x4a9   : > { %v2811_v27 = vpop.f32.mrf.mxu1 }
 0x4ab   : > { %v1262_v28 = vpop.f32.mrf.mxu1 }
 0x4c5   : > { %v2279_v29 = vpop.f32.mrf.mxu1 }
 0x4c6   : > { %v2078_v30 = vclamps-f32 %v2279_v29, 5.0 }
 0x4c7   : > { %v1350_v4 = vpop.f32.mrf.mxu1 }
 0x4c8   : > { %v1377_v31 = vmul.f32 1.442695, %v2078_v30  ;;  %v2076_v32 = vclamps-f32 %v1350_v4, 5.0 }
 0x4c9   : > { %v2280_v33 = vpop.f32.mrf.mxu1 }
 0x4ca   : > { %v1373_v39 = vmul.f32 1.442695, %v2076_v32  ;;  %v2079_v40 = vclamps-f32 %v2280_v33, 5.0  ;;  %2429 = vpow2.f32 %v1377_v31 }
 0x4cb   : > { %v1353_v7 = vpop.f32.mrf.mxu1 }
 0x4cc   : > { %2431 = vpow2.f32 %v1373_v39  ;;  %v1379_v43 = vmul.f32 1.442695, %v2079_v40  ;;  %v2077_v44 = vclamps-f32 %v1353_v7, 5.0 }
 0x4ce   : > { %2433 = vpow2.f32 %v1379_v43  ;;  %v1375_v14 = vmul.f32 1.442695, %v2077_v44 }
 0x4d0   : > { %2435 = vpow2.f32 %v1375_v14 }
 0x4d1   : > { %2437 = vrcp.f32 %v1275_v1 }
 0x4d7   : > { %v2430_v49 = vpop.eup %2429 }
 0x4d8   : > { %v1383_v54 = vmul.f32 %v2430_v49, %v2678_v13 }
 0x4d9   : > { %v2432_v50 = vpop.eup %2431 }
 0x4da   : > { %v1381_v51 = vmul.f32 %v2432_v50, %v2674_v10  ;;  %v1391_v63 = vsel %vm802_vm2, %v1383_v54, 0.0 }
 0x4db   : > { %v2434_v52 = vpop.eup %2433 }
 0x4dc   : > { %v1385_v53 = vsel %vm802_vm2, %v1381_v51, 0.0  ;;  %v1384_v57 = vmul.f32 %v2434_v52, %v2672_v8  ;;  %v803_v8 = vsel %vm802_vm2, %v2684_v16, 0.0  ;;  %v812_v16 = vsel %vm802_vm2, %v2681_v15, 0.0 }
 0x4dd   : > { %v2436_v55 = vpop.eup %2435  ;;  %1386 = vadd.xlane.f32.xlu1 %v1385_v53 }
 0x4de   : > { %v1382_v59 = vmul.f32 %v2436_v55, %v2676_v11  ;;  %v1398_v10 = vpack.c.bf16 %v1384_v57, %v1383_v54  ;;  %v1394_v13 = vsel %vm802_vm2, %v1384_v57, 0.0  ;;  %v1195_v11 = vpop.xlane.xlu1 %1194  ;;  %v2438_v19 = vpop.eup %2437 }
 0x4df   : > { %v1274_v2 = vadd.f32 1e-06, %v1195_v11  ;;  %v1283_v20 = vmul.f32 %v2438_v19, %v1262_v28 }
 0x4e0   : > { %v1388_v61 = vsel %vm802_vm2, %v1382_v59, 0.0  ;;  %v1397_v62 = vpack.c.bf16 %v1382_v59, %v1381_v51 }
 0x4e1   : > { %1389 = vadd.xlane.f32.xlu0 %v1388_v61  ;;  %1392 = vadd.xlane.f32.xlu1 %v1391_v63  ;;  %2439 = vrcp.f32 %v1274_v2 }
 0x4e2   : > { %2289 = vmatprep.mubr.msk.bf16.mxu0 %vm802_vm2, %v1397_v62  ;;  %2441 = vrcp.f32 %v1277_v9 }
 0x4e3   : > { %2290 = vmatmul.mubr.msk.bf16.vlgmr.msra.gmra.mxu0 %vm802_vm2, %v1398_v10  ;;  %2443 = vrcp.f32 %v1276_v12 }
 0x4e5   : > { %1395 = vadd.xlane.f32.xlu0 %v1394_v13  ;;  %804 = vadd.xlane.f32.xlu1 %v803_v8 }
 0x4e9   : > { %810 = vadd.xlane.f32.xlu1 %v809_v3  ;;  %807 = vadd.xlane.f32.xlu0 %v806_v58 }
 0x4ed   : > { %813 = vadd.xlane.f32.xlu0 %v812_v16 }
 0x4ee   : > { %v2440_v21 = vpop.eup %2439 }
 0x4ef   : > { %v1282_v22 = vmul.f32 %v2440_v21, %v1259_v5  ;;  %v2442_v17 = vpop.eup %2441 }
 0x4f0   : > { %v1285_v18 = vmul.f32 %v2442_v17, %v2811_v27  ;;  %v2444_v24 = vpop.eup %2443 }
 0x4f1   : > { %v2365_v23 = vpack.i.bf16 %v1283_v20, %v1282_v22  ;;  %v1284_v25 = vmul.f32 %v2444_v24, %v2809_v26  ;;  %v2389_v26 = vld [vmem:[%s2942_s5 + $0x8] sm:$0xff]  }
 0x4f2   : > { %2293 = vmatprep.subr.bf16.mxu0 %v2389_v26 }
 0x4f3   : > { %v2370_v15 = vpack.i.bf16 %v1285_v18, %v1284_v25  ;;  %2294 = vmatpush3.bf16.msra.mxu0 %v2389_v26 }
 0x4f4   : > { %2295 = vmatprep.subr.bf16.mxu0 %v2390_v41 }
 0x4f7   : > { %2296 = vmatpush3.bf16.msra.mxu0 %v2390_v41  ;;  %v2082_v41 = vld [vmem:[%s2943_s6] ss:$0 sm:$0xff] }
 0x4fa   : > { %2356 = vrot.lane.b32.xlu1 %v2355_v48, %s2496_s21 }
 0x4fe   : > { %2366 = vrot.lane.b32.xlu1 %v2365_v23, %s2497_s22 }
 0x502   : > { %2371 = vrot.lane.b32.xlu1 %v2370_v15, %s2497_s22 }
 0x503   : > { %2361 = vrot.lane.b32.xlu0 %v2360_v46, %s2496_s21 }
 0x566   : > { %v1387_v34 = vpop.xlane.xlu1 %1386 }
 0x567   : > { %v1466_v28 = vadd.f32 1e-06, %v1387_v34 }
 0x56a   : > { %v1390_v6 = vpop.xlane.xlu0 %1389  ;;  %v1393_v5 = vpop.xlane.xlu1 %1392 }
 0x56b   : > { %v1468_v47 = vadd.f32 1e-06, %v1393_v5  ;;  %v1467_v27 = vadd.f32 1e-06, %v1390_v6 }
 0x56d   : > { %2445 = vrcp.f32 %v1468_v47 }
 0x56e   : > { %v1396_v45 = vpop.xlane.xlu0 %1395  ;;  %v805_v49 = vpop.xlane.xlu1 %804 }
 0x56f   : > { %v1469_v48 = vadd.f32 1e-06, %v1396_v45  ;;  %v888_v53 = vadd.f32 1e-06, %v805_v49 }
 0x571   : > { %2447 = vrcp.f32 %v1469_v48 }
 0x572   : > { %2449 = vrcp.f32 %v1466_v28  ;;  %v808_v50 = vpop.xlane.xlu0 %807  ;;  %v811_v51 = vpop.xlane.xlu1 %810 }
 0x573   : > { %2451 = vrcp.f32 %v1467_v27  ;;  %v890_v54 = vadd.f32 1e-06, %v811_v51  ;;  %v889_v56 = vadd.f32 1e-06, %v808_v50  ;;  %v2480_v51 = vld [vmem:[%s2608_s20 + $0x18] sm:$0xff] }
 0x574   : > { %2453 = vrcp.f32 %v888_v53 }
 0x575   : > { %2455 = vrcp.f32 %v890_v54 }
 0x576   : > { %v814_v52 = vpop.xlane.xlu0 %813  ;;  %v2357_v57 = vpop.permute.xlu1 %2356 }
 0x577   : > { %v891_v55 = vadd.f32 1e-06, %v814_v52  ;;  %v2359_v58 = vunpack.i.h.bf16 %v2357_v57  ;;  %v2358_v9 = vunpack.i.l.bf16 %v2357_v57 }
 0x579   : > { %2457 = vrcp.f32 %v891_v55 }
 0x57a   : > { %v2446_v29 = vpop.eup %2445  ;;  %2459 = vrcp.f32 %v889_v56  ;;  %v2367_v59 = vpop.permute.xlu1 %2366 }
 0x57b   : > { %v2362_v10 = vpop.permute.xlu0 %2361  ;;  %v2368_v17 = vunpack.i.l.bf16 %v2367_v59 }
 0x57c   : > { %v2364_v2 = vunpack.i.h.bf16 %v2362_v10  ;;  %v2363_v3 = vunpack.i.l.bf16 %v2362_v10 }
 0x57e   : > { %v2448_v30 = vpop.eup %2447  ;;  %v2372_v8 = vpop.permute.xlu1 %2371 }
 0x57f   : > { %v2450_v31 = vpop.eup %2449  ;;  %v2374_v19 = vunpack.i.h.bf16 %v2372_v8  ;;  %v2373_v20 = vunpack.i.l.bf16 %v2372_v8 }
 0x580   : > { %v2452_v39 = vpop.eup %2451 }
 0x581   : > { %v2454_v60 = vpop.eup %2453 }
 0x582   : > { %v2456_v61 = vpop.eup %2455  ;;  %v896_v11 = vmul.f32 %v2454_v60, %v2726_v36 }
 0x583   : > { %v898_v0 = vmul.f32 %v2456_v61, %v2724_v35 }
 0x585   : > { %v1528_v16 = vsel %vm714_vm1, %v898_v0, %v2363_v3 }
 0x586   : > { %v2458_v62 = vpop.eup %2457  ;;  %v1533_v23 = vsel %vm1530_vm3, %v1528_v16, %v2373_v20  ;;  %v2391_v16 = vld [vmem:[%s2946_s9 + $0x8] sm:$0xff]   ;;  %v2393_v20 = vld [vmem:[%s2948_s11 + $0x18] sm:$0xff]  }
 0x587   : > { %v2460_v63 = vpop.eup %2459  ;;  %v899_v13 = vmul.f32 %v2458_v62, %v2728_v37  ;;  %v1526_v37 = vsel %vm714_vm1, %v896_v11, %v2358_v9  ;;  %2301 = vmatprep.subr.bf16.mxu1 %v2391_v16  ;;  %2309 = vmatprep.subr.bf16.mxu0 %v2393_v20 }
 0x588   : > { %v897_v1 = vmul.f32 %v2460_v63, %v2730_v38  ;;  %v2369_v38 = vunpack.i.h.bf16 %v2367_v59  ;;  %v1531_v34 = vsel %vm1530_vm3, %v1526_v37, %v2368_v17  ;;  %2302 = vmatpush3.bf16.msra.mxu1 %v2391_v16 }
 0x589   : > { %v1529_v12 = vsel %vm714_vm1, %v899_v13, %v2364_v2 }
 0x58a   : > { %v1527_v21 = vsel %vm714_vm1, %v897_v1, %v2359_v58  ;;  %v1534_v24 = vsel %vm1530_vm3, %v1529_v12, %v2374_v19  ;;  %v2392_v19 = vld [vmem:[%s2946_s9] sm:$0xff]  }
 0x58b   : > { %v1532_v6 = vsel %vm1530_vm3, %v1527_v21, %v2369_v38  ;;  %2303 = vmatprep.subr.bf16.mxu1 %v2392_v19 }
 0x58c   : > { %2304 = vmatpush3.bf16.msra.mxu1 %v2392_v19 }
 0x5a3   : > { %v2291_v42 = vpop.f32.mrf.mxu0 }
 0x5a4   : > { %v1476_v32 = vmul.f32 %v2446_v29, %v2291_v42 }
 0x5a5   : > { %v1451_v46 = vpop.f32.mrf.mxu0 }
 0x5a6   : > { %v1474_v7 = vmul.f32 %v2450_v31, %v1451_v46 }
 0x5a7   : > { %v2292_v4 = vpop.f32.mrf.mxu0 }
 0x5a8   : > { %v1477_v33 = vmul.f32 %v2448_v30, %v2292_v4  ;;  %v2477_v4 = vld [vmem:[%s2608_s20] sm:$0xff] }
 0x5a9   : > { %v1454_v40 = vpop.f32.mrf.mxu0 }
 0x5aa   : > { %v2380_v43 = vpack.i.bf16 %v1477_v33, %v1476_v32  ;;  %v1475_v44 = vmul.f32 %v2452_v39, %v1454_v40 }
 0x5ac   : > { %v2375_v14 = vpack.i.bf16 %v1475_v44, %v1474_v7  ;;  %2381 = vrot.lane.b32.xlu1 %v2380_v43, %s2498_s28  ;;  %v2478_v7 = vld [vmem:[%s2608_s20 + $0x10] sm:$0xff]  ;;  %v2479_v44 = vld [vmem:[%s2608_s20 + $0x8] sm:$0xff]  ;;  %s518_s20 = scalar_lea.vmem %s2952_s15, %s2596_s27 }
 0x5ae   : > { %2376 = vrot.lane.b32.xlu0 %v2375_v14, %s2498_s28 }
 0x61e   : > { %v2382_v35 = vpop.permute.xlu1 %2381 }
 0x61f   : > { %v2384_v36 = vunpack.i.h.bf16 %v2382_v35  ;;  %v2383_v22 = vunpack.i.l.bf16 %v2382_v35 }
 0x620   : > { %v2377_v18 = vpop.permute.xlu0 %2376 }
 0x621   : > { %v2379_v25 = vunpack.i.h.bf16 %v2377_v18  ;;  %v2378_v15 = vunpack.i.l.bf16 %v2377_v18  ;;  %v1538_v5 = vsel %vm1535_vm4, %v1533_v23, %v2383_v22  ;;  %v1539_v45 = vsel %vm1535_vm4, %v1534_v24, %v2384_v36 }
 0x622   : > { %v1541_v27 = vpack.c.bf16 %v1539_v45, %v1538_v5  ;;  %v2087_v5 = vld [vmem:[%s2944_s7] ss:$0 sm:$0xff] }
 0x623   : > { %v1537_v47 = vsel %vm1535_vm4, %v1532_v6, %v2379_v25  ;;  %v1536_v48 = vsel %vm1535_vm4, %v1531_v34, %v2378_v15 }
 0x624   : > { %v1540_v28 = vpack.c.bf16 %v1537_v47, %v1536_v48 }
 0x626   : > { %2297 = vmatprep.mubr.msk.bf16.mxu0 %vm555_vm0, %v1540_v28 }
 0x627   : > { %2298 = vmatmul.mubr.msk.bf16.vlgmr.msra.gmra.mxu0 %vm555_vm0, %v1541_v27 }
 0x628   : > { %2310 = vmatpush3.bf16.msra.mxu0 %v2393_v20 }
 0x6e7   : > { %v2299_v26 = vpop.f32.mrf.mxu0 }
 0x6e8   : > { %v1614_v46 = vadd.f32 %v2299_v26, %v2082_v41  ;;  %v2088_v26 = vld [vmem:[%s2945_s8] ss:$0 sm:$0xff] }
 0x6e9   : > { %v1605_v42 = vpop.f32.mrf.mxu0 }
 0x6ea   : > { %v1606_v29 = vadd.f32 %v2082_v41, %v1605_v42  ;;  %v1622_v43 = vadd.f32 %v2478_v7, %v1614_v46  ;;  %v2394_v7 = vld [vmem:[%s2948_s11 + $0x10] sm:$0xff]  }
 0x6eb   : > { %v2300_v30 = vpop.f32.mrf.mxu0  ;;  %2311 = vmatprep.subr.bf16.mxu0 %v2394_v7 }
 0x6ec   : > { %v1620_v31 = vadd.f32 %v2477_v4, %v1606_v29  ;;  %v1617_v33 = vadd.f32 %v2300_v30, %v2082_v41  ;;  %v1630_v50 = vsel %vm555_vm0, %v1622_v43, 0.0  ;;  %2312 = vmatpush3.bf16.msra.mxu0 %v2394_v7 }
 0x6ed   : > { %v1608_v32 = vpop.f32.mrf.mxu0 }
 0x6ee   : > { %v1609_v39 = vadd.f32 %v2082_v41, %v1608_v32  ;;  %v1624_v40 = vsel %vm555_vm0, %v1620_v31, 0.0  ;;  %v1623_v52 = vadd.f32 %v2480_v51, %v1617_v33 }
 0x6ef   : > { %1625 = vadd.xlane.f32.xlu0 %v1624_v40 }
 0x6f0   : > { %v1621_v14 = vadd.f32 %v2479_v44, %v1609_v39  ;;  %v1633_v53 = vsel %vm555_vm0, %v1623_v52, 0.0  ;;  %v2396_v44 = vld [vmem:[%s2948_s11] sm:$0xff]  }
 0x6f2   : > { %v1627_v49 = vsel %vm555_vm0, %v1621_v14, 0.0 }
 0x6f3   : > { %1628 = vadd.xlane.f32.xlu1 %v1627_v49  ;;  %1631 = vadd.xlane.f32.xlu0 %v1630_v50  ;;  %v2089_v50 = vld [vmem:[%s2947_s10] ss:$0 sm:$0xff] }
 0x6f7   : > { %1634 = vadd.xlane.f32.xlu0 %v1633_v53 }
 0x778   : > { %v1626_v54 = vpop.xlane.xlu0 %1625 }
 0x779   : > { %v1637_v55 = vmul.f32 0.03125, %v1626_v54 }
 0x77b   : > { %v1641_v56 = vsub.f32 %v1620_v31, %v1637_v55 }
 0x77c   : > { %v1629_v57 = vpop.xlane.xlu1 %1628  ;;  %v1632_v59 = vpop.xlane.xlu0 %1631 }
 0x77d   : > { %v1638_v60 = vmul.f32 0.03125, %v1629_v57  ;;  %v1639_v61 = vmul.f32 0.03125, %v1632_v59  ;;  %v1645_v62 = vmul.f32 %v1641_v56, %v1641_v56 }
 0x77f   : > { %v1642_v63 = vsub.f32 %v1621_v14, %v1638_v60  ;;  %v1643_v10 = vsub.f32 %v1622_v43, %v1639_v61  ;;  %v1649_v0 = vsel %vm555_vm0, %v1645_v62, 0.0  ;;  %v2395_v43 = vld [vmem:[%s2948_s11 + $0x8] sm:$0xff]  }
 0x780   : > { %1650 = vadd.xlane.f32.xlu1 %v1649_v0  ;;  %v1635_v13 = vpop.xlane.xlu0 %1634  ;;  %2313 = vmatprep.subr.bf16.mxu0 %v2395_v43  ;;  %v2094_v0 = vld [vmem:[%s2949_s12] ss:$0 sm:$0xff] }
 0x781   : > { %v1640_v8 = vmul.f32 0.03125, %v1635_v13  ;;  %v1646_v11 = vmul.f32 %v1642_v63, %v1642_v63  ;;  %v1647_v1 = vmul.f32 %v1643_v10, %v1643_v10  ;;  %2314 = vmatpush3.bf16.msra.mxu0 %v2395_v43 }
 0x782   : > { %2315 = vmatprep.subr.bf16.mxu0 %v2396_v44 }
 0x783   : > { %v1644_v2 = vsub.f32 %v1623_v52, %v1640_v8  ;;  %v1652_v3 = vsel %vm555_vm0, %v1646_v11, 0.0  ;;  %v1655_v58 = vsel %vm555_vm0, %v1647_v1, 0.0 }
 0x784   : > { %1653 = vadd.xlane.f32.xlu0 %v1652_v3  ;;  %1656 = vadd.xlane.f32.xlu1 %v1655_v58 }
 0x785   : > { %v1648_v9 = vmul.f32 %v1644_v2, %v1644_v2  ;;  %2316 = vmatpush3.bf16.msra.mxu0 %v2396_v44 }
 0x787   : > { %v1658_v12 = vsel %vm555_vm0, %v1648_v9, 0.0 }
 0x788   : > { %1659 = vadd.xlane.f32.xlu0 %v1658_v12 }
 0x809   : > { %v1651_v35 = vpop.xlane.xlu1 %1650 }
 0x80a   : > { %v1661_v37 = vmul.f32 0.03125, %v1651_v35 }
 0x80c   : > { %v1665_v21 = vadd.f32 1e-05, %v1661_v37 }
 0x80d   : > { %v1657_v36 = vpop.xlane.xlu1 %1656  ;;  %v1654_v22 = vpop.xlane.xlu0 %1653 }
 0x80e   : > { %2461 = vrsqrt.f32 %v1665_v21  ;;  %v1663_v38 = vmul.f32 0.03125, %v1657_v36  ;;  %v1662_v17 = vmul.f32 0.03125, %v1654_v22 }
 0x810   : > { %v1667_v18 = vadd.f32 1e-05, %v1663_v38  ;;  %v1666_v23 = vadd.f32 1e-05, %v1662_v17 }
 0x811   : > { %v1660_v24 = vpop.xlane.xlu0 %1659 }
 0x812   : > { %2463 = vrsqrt.f32 %v1667_v18  ;;  %v1664_v25 = vmul.f32 0.03125, %v1660_v24 }
 0x813   : > { %2465 = vrsqrt.f32 %v1666_v23 }
 0x814   : > { %v1668_v15 = vadd.f32 1e-05, %v1664_v25 }
 0x816   : > { %2467 = vrsqrt.f32 %v1668_v15 }
 0x81b   : > { %v2462_v34 = vpop.eup %2461 }
 0x81c   : > { %v1673_v6 = vmul.f32 %v2462_v34, %v1641_v56 }
 0x81e   : > { %v1684_v27 = vmul.f32 %v2087_v5, %v1673_v6 }
 0x81f   : > { %v2464_v45 = vpop.eup %2463 }
 0x820   : > { %v2466_v47 = vpop.eup %2465  ;;  %v1675_v48 = vmul.f32 %v2464_v45, %v1643_v10  ;;  %v1695_v30 = vadd.f32 %v2088_v26, %v1684_v27 }
 0x821   : > { %v1674_v28 = vmul.f32 %v2466_v47, %v1642_v63 }
 0x822   : > { %v1686_v29 = vmul.f32 %v2087_v5, %v1675_v48 }
 0x823   : > { %v2468_v41 = vpop.eup %2467  ;;  %v1685_v42 = vmul.f32 %v2087_v5, %v1674_v28 }
 0x824   : > { %v1676_v46 = vmul.f32 %v2468_v41, %v1644_v2  ;;  %v1697_v33 = vadd.f32 %v2088_v26, %v1686_v29 }
 0x825   : > { %v1696_v4 = vadd.f32 %v2088_v26, %v1685_v42 }
 0x826   : > { %v1687_v31 = vmul.f32 %v2087_v5, %v1676_v46 }
 0x827   : > { %v1699_v32 = vpack.c.bf16 %v1696_v4, %v1695_v30 }
 0x828   : > { %v1698_v39 = vadd.f32 %v2088_v26, %v1687_v31 }
 0x829   : > { %2305 = vmatprep.mubr.msk.bf16.mxu1 %vm555_vm0, %v1699_v32 }
 0x82a   : > { %v1700_v40 = vpack.c.bf16 %v1698_v39, %v1697_v33 }
 0x82c   : > { %2306 = vmatmul.mubr.msk.bf16.vlgmr.msra.gmra.mxu1 %vm555_vm0, %v1700_v40 }
 0x8ec   : > { %v2307_v14 = vpop.f32.mrf.mxu1 }
 0x8ed   : > { %v1773_v54 = vadd.f32 %v2307_v14, %v2089_v50 }
 0x8ee   : > { %v1764_v49 = vpop.f32.mrf.mxu1 }
 0x8ef   : > { %v1765_v52 = vadd.f32 %v2089_v50, %v1764_v49  ;;  %v1781_v61 = vmax.f32 %v1773_v54, 0.0  ;;  %v2101_v49 = vld [vmem:[%s2950_s13] ss:$0 sm:$0xff] }
 0x8f0   : > { %v2308_v51 = vpop.f32.mrf.mxu1 }
 0x8f1   : > { %v1776_v53 = vadd.f32 %v2308_v51, %v2089_v50  ;;  %v1779_v59 = vmax.f32 %v1765_v52, 0.0  ;;  %v2102_v51 = vld [vmem:[%s2951_s14] ss:$0 sm:$0xff] }
 0x8f2   : > { %v1767_v55 = vpop.f32.mrf.mxu1 }
 0x8f3   : > { %v1768_v56 = vadd.f32 %v2089_v50, %v1767_v55  ;;  %v1782_v57 = vmax.f32 %v1776_v53, 0.0 }
 0x8f5   : > { %v1780_v60 = vmax.f32 %v1768_v56, 0.0  ;;  %v1784_v63 = vpack.c.bf16 %v1782_v57, %v1781_v61 }
 0x8f7   : > { %v1783_v62 = vpack.c.bf16 %v1780_v60, %v1779_v59 }
 0x8f9   : > { %2317 = vmatprep.mubr.msk.bf16.mxu0 %vm802_vm2, %v1783_v62 }
 0x8fa   : > { %2318 = vmatmul.mubr.msk.bf16.vlgmr.msra.gmra.mxu0 %vm802_vm2, %v1784_v63 }
 0x9ba   : > { %v2319_v10 = vpop.f32.mrf.mxu0 }
 0x9bb   : > { %v1873_v8 = vadd.f32 %v2319_v10, %v2094_v0 }
 0x9bc   : > { %v1864_v13 = vpop.f32.mrf.mxu0 }
 0x9bd   : > { %v1865_v11 = vadd.f32 %v2094_v0, %v1864_v13  ;;  %v1881_v16 = vadd.f32 %v1873_v8, %v1697_v33 }
 0x9be   : > { %v2320_v1 = vpop.f32.mrf.mxu0 }
 0x9bf   : > { %v1879_v2 = vadd.f32 %v1865_v11, %v1695_v30  ;;  %v1876_v58 = vadd.f32 %v2320_v1, %v2094_v0  ;;  %v1889_v35 = vsel %vm555_vm0, %v1881_v16, 0.0 }
 0x9c0   : > { %v1867_v3 = vpop.f32.mrf.mxu0 }
 0x9c1   : > { %v1868_v9 = vadd.f32 %v2094_v0, %v1867_v3  ;;  %v1883_v12 = vsel %vm555_vm0, %v1879_v2, 0.0  ;;  %v1882_v37 = vadd.f32 %v1876_v58, %v1698_v39 }
 0x9c2   : > { %1884 = vadd.xlane.f32.xlu1 %v1883_v12 }
 0x9c3   : > { %v1880_v19 = vadd.f32 %v1868_v9, %v1696_v4  ;;  %v1892_v21 = vsel %vm555_vm0, %v1882_v37, 0.0 }
 0x9c5   : > { %v1886_v20 = vsel %vm555_vm0, %v1880_v19, 0.0 }
 0x9c6   : > { %1887 = vadd.xlane.f32.xlu0 %v1886_v20  ;;  %1890 = vadd.xlane.f32.xlu1 %v1889_v35 }
 0x9ca   : > { %1893 = vadd.xlane.f32.xlu0 %v1892_v21 }
 0xa4b   : > { %v1885_v36 = vpop.xlane.xlu1 %1884 }
 0xa4c   : > { %v1895_v22 = vmul.f32 0.03125, %v1885_v36 }
 0xa4e   : > { %v1899_v38 = vsub.f32 %v1879_v2, %v1895_v22 }
 0xa4f   : > { %v1888_v17 = vpop.xlane.xlu0 %1887  ;;  %v1891_v18 = vpop.xlane.xlu1 %1890 }
 0xa50   : > { %v1896_v23 = vmul.f32 0.03125, %v1888_v17  ;;  %v1897_v24 = vmul.f32 0.03125, %v1891_v18  ;;  %v1903_v25 = vmul.f32 %v1899_v38, %v1899_v38 }
 0xa52   : > { %v1900_v15 = vsub.f32 %v1880_v19, %v1896_v23  ;;  %v1901_v34 = vsub.f32 %v1881_v16, %v1897_v24  ;;  %v1907_v6 = vsel %vm555_vm0, %v1903_v25, 0.0 }
 0xa53   : > { %v1894_v5 = vpop.xlane.xlu0 %1893  ;;  %1908 = vadd.xlane.f32.xlu1 %v1907_v6 }
 0xa54   : > { %v1898_v45 = vmul.f32 0.03125, %v1894_v5  ;;  %v1904_v47 = vmul.f32 %v1900_v15, %v1900_v15  ;;  %v1905_v48 = vmul.f32 %v1901_v34, %v1901_v34 }
 0xa56   : > { %v1902_v28 = vsub.f32 %v1882_v37, %v1898_v45  ;;  %v1910_v27 = vsel %vm555_vm0, %v1904_v47, 0.0  ;;  %v1913_v26 = vsel %vm555_vm0, %v1905_v48, 0.0 }
 0xa57   : > { %1911 = vadd.xlane.f32.xlu0 %v1910_v27  ;;  %1914 = vadd.xlane.f32.xlu1 %v1913_v26 }
 0xa58   : > { %v1906_v41 = vmul.f32 %v1902_v28, %v1902_v28 }
 0xa5a   : > { %v1916_v42 = vsel %vm555_vm0, %v1906_v41, 0.0 }
 0xa5b   : > { %1917 = vadd.xlane.f32.xlu0 %v1916_v42 }
 0xadc   : > { %v1909_v46 = vpop.xlane.xlu1 %1908 }
 0xadd   : > { %v1919_v29 = vmul.f32 0.03125, %v1909_v46 }
 0xadf   : > { %v1923_v30 = vadd.f32 1e-05, %v1919_v29 }
 0xae0   : > { %v1912_v4 = vpop.xlane.xlu0 %1911  ;;  %v1915_v31 = vpop.xlane.xlu1 %1914 }
 0xae1   : > { %2469 = vrsqrt.f32 %v1923_v30  ;;  %v1920_v32 = vmul.f32 0.03125, %v1912_v4  ;;  %v1921_v33 = vmul.f32 0.03125, %v1915_v31 }
 0xae3   : > { %v1924_v39 = vadd.f32 1e-05, %v1920_v32  ;;  %v1925_v40 = vadd.f32 1e-05, %v1921_v33 }
 0xae4   : > { %v1918_v7 = vpop.xlane.xlu0 %1917 }
 0xae5   : > { %2471 = vrsqrt.f32 %v1924_v39  ;;  %v1922_v43 = vmul.f32 0.03125, %v1918_v7 }
 0xae6   : > { %2473 = vrsqrt.f32 %v1925_v40 }
 0xae7   : > { %v1926_v44 = vadd.f32 1e-05, %v1922_v43 }
 0xae9   : > { %2475 = vrsqrt.f32 %v1926_v44 }
 0xaee   : > { %v2470_v14 = vpop.eup %2469 }
 0xaef   : > { %v1931_v50 = vmul.f32 %v2470_v14, %v1899_v38 }
 0xaf1   : > { %v1942_v52 = vmul.f32 %v2101_v49, %v1931_v50 }
 0xaf2   : > { %v2472_v53 = vpop.eup %2471 }
 0xaf3   : > { %v2474_v54 = vpop.eup %2473  ;;  %v1953_v55 = vadd.f32 %v2102_v51, %v1942_v52  ;;  %v1932_v56 = vmul.f32 %v2472_v53, %v1900_v15 }
 0xaf4   : > { %v1933_v57 = vmul.f32 %v2474_v54, %v1901_v34 }
 0xaf5   : > { %1957 = vst.msk [vmem:[%s518_s20] sm:$0xff] %vm555_vm0, %v1953_v55  ;;  %v1943_v59 = vmul.f32 %v2101_v49, %v1932_v56 }
 0xaf6   : > { %v2476_v60 = vpop.eup %2475  ;;  %v1944_v61 = vmul.f32 %v2101_v49, %v1933_v57 }
 0xaf7   : > { %v1954_v62 = vadd.f32 %v2102_v51, %v1943_v59  ;;  %v1934_v63 = vmul.f32 %v2476_v60, %v1902_v28 }
 0xaf8   : > { %v1955_v10 = vadd.f32 %v2102_v51, %v1944_v61 }
 0xaf9   : > { %1958 = vst.msk [vmem:[%s518_s20 + $0x8] sm:$0xff] %vm555_vm0, %v1954_v62  ;;  %v1945_v0 = vmul.f32 %v2101_v49, %v1934_v63 }
 0xafa   : > { %1959 = vst.msk [vmem:[%s518_s20 + $0x10] sm:$0xff] %vm555_vm0, %v1955_v10 }
 0xafb   : > { %v1956_v13 = vadd.f32 %v2102_v51, %v1945_v0 }
 0xafd   : > { %1960 = vst.msk [vmem:[%s518_s20 + $0x18] sm:$0xff] %vm555_vm0, %v1956_v13 }
 0xafe PF: > { %s25_s18 = sadd.s32 1, %s2487_s18  }
 0xaff   : > { %p22_p4 = scmp.ge.s32.totalorder %s25_s18, 4  }
 0xb01   :  { %24 = sbr.rel (!%p22_p4) target bundleno = 1 (0x1), region = 113 }

</bundles_post_ra>
